<compile_context>
chip_gen: v7x
topology: tpu7x:2x2x1
jax: 0.10.0
libtpu: 0.0.40
codegen_flags: <defaults>
</compile_context>

<pallas_src>
import math
import functools

import jax
import jax.numpy as jnp
from jax import lax
from jax.experimental import pallas as pl
from jax.experimental.pallas import tpu as pltpu


_INV24 = 1.0 / float(1 << 24)     # Python floats only -> never captured consts
_TWO_PI = 2.0 * math.pi


def _cdiv(a, b):
    return -(-a // b)


def _round_up(a, b):
    return _cdiv(a, b) * b


def _bits_to_open_uniform(bits):
    """Random bits -> f32 uniform in the open interval (0, 1).

    Uses the low 24 bits and converts through int32 (the most portable
    conversion path across Mosaic and interpret environments)."""
    u24 = (bits & 0x00FFFFFF).astype(jnp.int32).astype(jnp.float32)
    return (u24 + 0.5) * _INV24


def _bm_write_chunk(o_ref, base, chunk, b1, b2, mean, std):
    """Box-Muller (both branches) on one sublane-aligned row chunk.

    Writes N(mean, std) to o_ref rows [base, base+chunk) (cos branch) and
    [base+chunk, base+2*chunk) (sin branch).  `mean` / `std` are Python
    floats, so identity shift/scale is elided at trace time.  `base` is
    always loop_index * (2*chunk), so stores stay sublane aligned."""
    u1 = _bits_to_open_uniform(b1)
    u2 = _bits_to_open_uniform(b2)
    r = jnp.sqrt(-2.0 * jnp.log(u1))
    if std != 1.0:
        r = r * std                       # fold std once per two outputs
    theta = _TWO_PI * u2
    z0 = r * jnp.cos(theta)
    z1 = r * jnp.sin(theta)
    if mean != 0.0:
        z0 = z0 + mean
        z1 = z1 + mean
    o_ref[pl.ds(base, chunk), :] = z0.astype(o_ref.dtype)
    o_ref[pl.ds(base + chunk, chunk), :] = z1.astype(o_ref.dtype)


def _noise_kernel_hwprng(seed_ref, o_ref, *, mean, std, chunk):
    """Fast path: on-chip PRNG, chunked Box-Muller, 2-word per-block seed."""
    pltpu.prng_seed(seed_ref[0], pl.program_id(0))
    rows, cols = o_ref.shape
    n_pairs = rows // (2 * chunk)

    def body(c, carry):
        base = c * (2 * chunk)
        b1 = pltpu.prng_random_bits((chunk, cols))
        b2 = pltpu.prng_random_bits((chunk, cols))
        _bm_write_chunk(o_ref, base, chunk, b1, b2, mean, std)
        return carry

    lax.fori_loop(0, n_pairs, body, 0)


def _noise_kernel_portable(bits_ref, o_ref, *, mean, std, chunk):
    """Fallback: same chunked Box-Muller, bits streamed in from HBM.

    NOTE: ~3x the HBM traffic of the fast path; portability only."""
    rows, cols = o_ref.shape
    n_pairs = rows // (2 * chunk)

    def body(c, carry):
        base = c * (2 * chunk)
        b1 = bits_ref[pl.ds(base, chunk), :]
        b2 = bits_ref[pl.ds(base + chunk, chunk), :]
        _bm_write_chunk(o_ref, base, chunk, b1, b2, mean, std)
        return carry

    lax.fori_loop(0, n_pairs, body, 0)


@functools.lru_cache(maxsize=None)
def _hw_prng_available():
    """True iff the TPU hardware-PRNG path lowers and runs in this env."""
    if jax.default_backend() != "tpu":
        return False
    try:
        probe = pl.pallas_call(
            functools.partial(_noise_kernel_hwprng, mean=0.0, std=1.0, chunk=8),
            out_shape=jax.ShapeDtypeStruct((16, 128), jnp.float32),
            grid=(1,),
            in_specs=[pl.BlockSpec(memory_space=pltpu.MemorySpace.SMEM)],
            out_specs=pl.BlockSpec((16, 128), lambda i: (0, 0)),
        )(jnp.zeros((1,), jnp.int32))
        jax.block_until_ready(probe)
        return True
    except Exception:
        return False


def _vmem_capacity_bytes():
    try:
        return int(pltpu.get_tpu_info().vmem_capacity_bytes)
    except Exception:
        return 64 << 20          # conservative (v7x per-TensorCore VMEM)


def noise_op(x, stride, mean, std, seed=0):
    """JAX/Pallas equivalent of NoiseOp(stride, mean, std).forward(x)."""
    n, c, h, w = x.shape
    if stride != 1:
        ho, wo = _cdiv(h, stride), _cdiv(w, stride)   # x[:, :, ::s, ::s] extents
    else:
        ho, wo = h, w

    total = n * c * ho * wo
    dtype = x.dtype
    itemsize = jnp.dtype(dtype).itemsize
    sub = {4: 8, 2: 16, 1: 32}.get(itemsize, 8)       # sublane packing

    # Lane-dense columns; prefer a value dividing `total` so no tail padding
    # (and hence no epilogue slice-copy) is needed.
    cols = 512
    for cand in (2048, 1024, 512, 256, 128):
        if total % cand == 0:
            cols = cand
            break

    # Sublane-aligned Box-Muller chunk: cos strip + sin strip per iteration,
    # ~8-16K elements so the temporaries stay in vregs.
    chunk = max(sub, ((8192 // cols) // sub) * sub)
    unit = 2 * chunk

    rows = _cdiv(total, cols)

    # Block sizing: ~4-8 MiB slabs, generation-aware (64 MiB VMEM on v7x vs
    # 128 MiB on v5e/v6e), and >= 2 blocks whenever possible so the
    # "parallel" grid axis spans both v7x TensorCores.
    vmem_cap = _vmem_capacity_bytes()
    block_budget = min(8 << 20, vmem_cap // 8)
    tm_target = max(unit, (block_budget // (cols * itemsize)) // unit * unit)
    if rows > unit:
        tm_cap = min(tm_target, _round_up(_cdiv(rows, 2), unit))
    else:
        tm_cap = unit
    # Prefer a tile that divides rows exactly (no row padding -> no epilogue
    # copy), as long as it stays within 4x of the target block size.
    tm = tm_cap
    if total % cols == 0:
        tm_min = max(unit, (tm_cap // 4) // unit * unit)
        for cand in range(tm_cap, tm_min - 1, -unit):
            if rows % cand == 0:
                tm = cand
                break

    grid_m = _cdiv(rows, tm)
    rows_padded = grid_m * tm
    total_gen = rows_padded * cols

    mean_f, std_f = float(mean), float(std)
    out_shape = jax.ShapeDtypeStruct((rows_padded, cols), dtype)
    out_spec = pl.BlockSpec((tm, cols), lambda i: (i, 0))
    out_block_bytes = tm * cols * itemsize

    if _hw_prng_available():
        vmem_limit = min(vmem_cap, max(32 << 20, 2 * out_block_bytes + (8 << 20)))
        seed_arr = jnp.asarray([seed], dtype=jnp.int32)
        out2d = pl.pallas_call(
            functools.partial(_noise_kernel_hwprng,
                              mean=mean_f, std=std_f, chunk=chunk),
            out_shape=out_shape,
            grid=(grid_m,),
            in_specs=[pl.BlockSpec(memory_space=pltpu.MemorySpace.SMEM)],
            out_specs=out_spec,
            compiler_params=pltpu.CompilerParams(
                dimension_semantics=("parallel",),
                vmem_limit_bytes=vmem_limit),
            cost_estimate=pl.CostEstimate(
                flops=10 * total_gen,
                transcendentals=2 * total_gen,
                bytes_accessed=total_gen * itemsize),
        )(seed_arr)
    else:
        # Portable fallback (no TPU PRNG lowering here): stream uint32 bits in.
        bits = jax.random.bits(jax.random.PRNGKey(seed),
                               (rows_padded, cols), dtype=jnp.uint32)
        bits_block_bytes = tm * cols * 4
        vmem_limit = min(
            vmem_cap,
            max(32 << 20, 2 * (out_block_bytes + bits_block_bytes) + (8 << 20)))
        out2d = pl.pallas_call(
            functools.partial(_noise_kernel_portable,
                              mean=mean_f, std=std_f, chunk=chunk),
            out_shape=out_shape,
            grid=(grid_m,),
            in_specs=[pl.BlockSpec((tm, cols), lambda i: (i, 0))],
            out_specs=out_spec,
            compiler_params=pltpu.CompilerParams(
                dimension_semantics=("parallel",),
                vmem_limit_bytes=vmem_limit),
            cost_estimate=pl.CostEstimate(
                flops=10 * total_gen,
                transcendentals=2 * total_gen,
                bytes_accessed=total_gen * (itemsize + 4)),
        )(bits)

    if total_gen == total:
        return out2d.reshape(n, c, ho, wo)       # no padding -> no extra copy
    return out2d.reshape(-1)[:total].reshape(n, c, ho, wo)


if __name__ == "__main__":
    key = jax.random.PRNGKey(0)
    # Small NCHW input consistent with the module's conv-style usage.
    x = jax.random.normal(key, (2, 4, 16, 16), dtype=jnp.float32)

    # Strided path.
    out = noise_op(x, stride=2, mean=0.0, std=1.0, seed=0)
    out = jax.block_until_ready(out)
    assert out.shape == (2, 4, 8, 8), out.shape
    assert out.dtype == x.dtype, out.dtype
    assert bool(jnp.all(jnp.isfinite(out)))

    # Unit-stride path with nonzero mean / std != 1 (loose statistical sanity).
    out1 = jax.block_until_ready(noise_op(x, stride=1, mean=0.5, std=2.0, seed=1))
    assert out1.shape == x.shape, out1.shape
    assert bool(jnp.all(jnp.isfinite(out1)))
    assert abs(float(jnp.mean(out1)) - 0.5) < 0.5
    assert 1.0 < float(jnp.std(out1)) < 3.0

    print("KERNEL_OK")
</pallas_src>

<mosaic_0001>
module attributes {stable_mosaic.version = 11 : i64} {
  func.func @_noise_kernel_portable(%arg0: i32, %arg1: memref<32x512xi32, #tpu.memory_space<vmem>>, %arg2: memref<32x512xf32, #tpu.memory_space<vmem>>) attributes {dimension_semantics = [#tpu.dimension_semantics<parallel>], iteration_bounds = array<i64: 1>, scalar_prefetch = 0 : i64, scratch_operands = 0 : i64, tpu.core_type = #tpu.core_type<tc>, window_params = [{transform_indices = @transform_0, window_bounds = array<i64: 32, 512>}, {transform_indices = @transform_1, window_bounds = array<i64: 32, 512>}]} {
    %c0_i32 = arith.constant 0 : i32
    %c32_i32 = arith.constant 32 : i32
    %0 = arith.muli %c0_i32, %c32_i32 : i32
    %1 = arith.index_cast %0 : i32 to index
    %c0 = arith.constant 0 : index
    %2 = vector.load %arg1[%1, %c0] : memref<32x512xi32, #tpu.memory_space<vmem>>, vector<16x512xi32>
    %c16_i32 = arith.constant 16 : i32
    %3 = arith.addi %0, %c16_i32 : i32
    %4 = arith.index_cast %3 : i32 to index
    %c0_0 = arith.constant 0 : index
    %5 = vector.load %arg1[%4, %c0_0] : memref<32x512xi32, #tpu.memory_space<vmem>>, vector<16x512xi32>
    %c16777215_i32 = arith.constant 16777215 : i32
    %6 = vector.broadcast %c16777215_i32 : i32 to vector<16x512xi32>
    %7 = arith.andi %2, %6 : vector<16x512xi32>
    %8 = arith.sitofp %7 : vector<16x512xi32> to vector<16x512xf32>
    %cst = arith.constant 5.000000e-01 : f32
    %9 = vector.broadcast %cst : f32 to vector<16x512xf32>
    %10 = arith.addf %8, %9 : vector<16x512xf32>
    %cst_1 = arith.constant 5.96046448E-8 : f32
    %11 = vector.broadcast %cst_1 : f32 to vector<16x512xf32>
    %12 = arith.mulf %10, %11 : vector<16x512xf32>
    %c16777215_i32_2 = arith.constant 16777215 : i32
    %13 = vector.broadcast %c16777215_i32_2 : i32 to vector<16x512xi32>
    %14 = arith.andi %5, %13 : vector<16x512xi32>
    %15 = arith.sitofp %14 : vector<16x512xi32> to vector<16x512xf32>
    %cst_3 = arith.constant 5.000000e-01 : f32
    %16 = vector.broadcast %cst_3 : f32 to vector<16x512xf32>
    %17 = arith.addf %15, %16 : vector<16x512xf32>
    %cst_4 = arith.constant 5.96046448E-8 : f32
    %18 = vector.broadcast %cst_4 : f32 to vector<16x512xf32>
    %19 = arith.mulf %17, %18 : vector<16x512xf32>
    %20 = math.log %12 : vector<16x512xf32>
    %cst_5 = arith.constant -2.000000e+00 : f32
    %21 = vector.broadcast %cst_5 : f32 to vector<16x512xf32>
    %22 = arith.mulf %21, %20 : vector<16x512xf32>
    %23 = math.sqrt %22 : vector<16x512xf32>
    %cst_6 = arith.constant 6.28318548 : f32
    %24 = vector.broadcast %cst_6 : f32 to vector<16x512xf32>
    %25 = arith.mulf %24, %19 : vector<16x512xf32>
    %26 = math.cos %25 : vector<16x512xf32>
    %27 = arith.mulf %23, %26 : vector<16x512xf32>
    %28 = math.sin %25 : vector<16x512xf32>
    %29 = arith.mulf %23, %28 : vector<16x512xf32>
    %30 = arith.index_cast %0 : i32 to index
    %c0_7 = arith.constant 0 : index
    %31 = vector.load %arg2[%30, %c0_7] : memref<32x512xf32, #tpu.memory_space<vmem>>, vector<16x512xf32>
    tpu.vector_store %arg2[%30, %c0_7], %27 {strides = array<i32>} : memref<32x512xf32, #tpu.memory_space<vmem>>, vector<16x512xf32>,
    %c16_i32_8 = arith.constant 16 : i32
    %32 = arith.addi %0, %c16_i32_8 : i32
    %33 = arith.index_cast %32 : i32 to index
    %c0_9 = arith.constant 0 : index
    %34 = vector.load %arg2[%33, %c0_9] : memref<32x512xf32, #tpu.memory_space<vmem>>, vector<16x512xf32>
    tpu.vector_store %arg2[%33, %c0_9], %29 {strides = array<i32>} : memref<32x512xf32, #tpu.memory_space<vmem>>, vector<16x512xf32>,
    %c1_i32 = arith.constant 1 : i32
    return
  }
  func.func @transform_0(%arg0: i32) -> (i32, i32) {
    %c0_i32 = arith.constant 0 : i32
    %c0_i32_0 = arith.constant 0 : i32
    return %arg0, %c0_i32 : i32, i32
  }
  func.func @transform_1(%arg0: i32) -> (i32, i32) {
    %c0_i32 = arith.constant 0 : i32
    %c0_i32_0 = arith.constant 0 : i32
    return %arg0, %c0_i32 : i32, i32
  }
}

</mosaic_0001>

<bundles_post_ra>
// kernel: tpu_custom_call.1
= control target key start
LH: loop header
LB: loop body
LE: loop exit
PB: predicated region body
PF: predicated region fallthrough
CT: control target
= control target key end

     0   :  { %6 = vsyncpa [#allocation3], 0  ;;  %s3114_s0 = inlined_call_operand.hbm [shape: u32[32,512], index: 0, kind: input, shape index: {}]   ;;  %s3115_s1 = inlined_call_operand.hbm [shape: f32[32,512], index: 1, kind: output, shape index: {}]  }
   0x1   :  { %7 = vsyncpa [#allocation4], 0  ;;  %s2114_s6 = smov [#allocation2]   ;;  %s2066_s10 = scalar_lea.hbm %s3114_s0, 2048 }
   0x2   :  { %s13_s7 = sshll.u32 %s2114_s6, 4  ;;  %p2067_p0 = scmp.ne.s32.totalorder %s3114_s0, %s2066_s10  ;;  %s14_s7 = int_to_ptr.vmem [resolvable:$true] %s13_s7 }
   0x3   :  { %p2070_p1 = scmp.lt.u32.totalorder %s2066_s10, %s3114_s0 }
   0x5   :  { %p2072_p2 = pnand %p2070_p1, %p2067_p0 }
   0x7   :  { %2075 = shalt.err (!%p2072_p2)
}
   0x8   :  { %s2076_s15 = scalar_lea.vmem %s14_s7, 2048  ;;  %p2081_p4 = scmp.lt.s32.totalorder %s14_s7, %s14_s7 }
   0x9   :  { %p2077_p3 = scmp.ne.s32.totalorder %s14_s7, %s2076_s15  ;;  %p2082_p5 = scmp.lt.s32.totalorder %s2076_s15, %s2076_s15 }
   0xb   :  { %p2083_p6 = por %p2082_p5, %p2081_p4 }
   0xd   :  { %p2084_p7 = pnand %p2083_p6, %p2077_p3 }
   0xf   :  { %2087 = shalt.err (!%p2084_p7)
}
  0x10   :  { %s2115_s16 = smov 512   ;;  %s2116_s17 = smov 32  }
  0x11   :  { %19 = dma.hbm_to_vmem [thread:$0]  %s3114_s0, 2048, %s14_s7, [#allocation3], %s2115_s16, %s2115_s16, %s2116_s17  }
  0x12   :  { %2110 = dma.done.wait [#allocation3], 2048  }
  0x13   :  { %2111 = vsyncadd [#allocation3], 4294965248  ;;  %v23_v0 = vld [vmem:[#allocation2] sm:$0xff]  ;;  %v32_v4 = vld [vmem:[#allocation2 + $0x48] sm:$0xff]  ;;  %v2117_v54 = vmov 683565275  }
  0x14   :  { %v31_v1 = vld [vmem:[#allocation2 + $0x40] sm:$0xff]  ;;  %v39_v2 = vand.u32 16777215, %v23_v0  ;;  %v72_v5 = vand.u32 16777215, %v32_v4  ;;  %v24_v8 = vld [vmem:[#allocation2 + $0x8] sm:$0xff] }
  0x15   :  { %v71_v3 = vand.u32 16777215, %v31_v1  ;;  %v33_v12 = vld [vmem:[#allocation2 + $0x50] sm:$0xff]  ;;  %v40_v13 = vand.u32 16777215, %v24_v8  ;;  %v26_v40 = vld [vmem:[#allocation2 + $0x18] sm:$0xff] }
  0x16   :  { %v47_v6 = vcvt.s32.f32 %v39_v2  ;;  %v80_v9 = vcvt.s32.f32 %v72_v5  ;;  %v73_v18 = vand.u32 16777215, %v33_v12  ;;  %v25_v23 = vld [vmem:[#allocation2 + $0x10] sm:$0xff]  ;;  %v2159_v41 = vld [vmem:[#allocation2 + $0x58] sm:$0xff]  ;;  %v42_v48 = vand.u32 16777215, %v26_v40 }
  0x17   :  { %v79_v7 = vcvt.s32.f32 %v71_v3  ;;  %v48_v20 = vcvt.s32.f32 %v40_v13  ;;  %v41_v30 = vand.u32 16777215, %v25_v23  ;;  %v74_v49 = vand.u32 16777215, %v2159_v41  ;;  %s2123_s0 = smov [#allocation5]  }
  0x18   :  { %v55_v10 = vadd.f32 0.5, %v47_v6  ;;  %v88_v14 = vadd.f32 0.5, %v80_v9  ;;  %v81_v26 = vcvt.s32.f32 %v73_v18  ;;  %v3134_v56 = vmov 2475754826   ;;  %s1884_s20 = sshll.u32 %s2123_s0, 4  ;;  %s1885_s20 = int_to_ptr.vmem [resolvable:$true] %s1884_s20 }
  0x19   :  { %v87_v11 = vadd.f32 0.5, %v79_v7  ;;  %v56_v28 = vadd.f32 0.5, %v48_v20  ;;  %v49_v39 = vcvt.s32.f32 %v41_v30  ;;  %v3132_v58 = vmov 2131351028   ;;  %s2088_s21 = scalar_lea.vmem %s1885_s20, 2048  ;;  %p2093_p9 = scmp.lt.s32.totalorder %s1885_s20, %s1885_s20 }
  0x1a   :  { %v63_v15 = vmul.f32 5.9604645e-08, %v55_v10  ;;  %v96_v17 = vmul.f32 5.9604645e-08, %v88_v14  ;;  %v89_v34 = vadd.f32 0.5, %v81_v26  ;;  %v3128_v3 = vmov 2102212464   ;;  %p2089_p8 = scmp.ne.s32.totalorder %s1885_s20, %s2088_s21  ;;  %p2094_p10 = scmp.lt.s32.totalorder %s2088_s21, %s2088_s21 }
  0x1b   :  { %v95_v16 = vmul.f32 5.9604645e-08, %v87_v11  ;;  %v64_v36 = vmul.f32 5.9604645e-08, %v56_v28  ;;  %v57_v52 = vadd.f32 0.5, %v49_v39  ;;  %v3130_v6 = vmov 920167782  }
  0x1c   :  { %v2151_v21 = vmul.f32 6.2831855, %v96_v17  ;;  %2002 = vlog2.f32 %v63_v15  ;;  %v97_v44 = vmul.f32 5.9604645e-08, %v89_v34  ;;  %v3125_v9 = vmov 1326507024   ;;  %p2095_p11 = por %p2094_p10, %p2093_p9 }
  0x1d   :  { %v2149_v19 = vmul.f32 6.2831855, %v95_v16  ;;  %2004 = vlog2.f32 %v64_v36 }
  0x1e   :  { %v297_v25 = vand.u32 2139095040, %v2151_v21  ;;  %v294_v37 = vand.u32 2147483647, %v2151_v21  ;;  %v2176_v63 = vmul.f32 6.2831855, %v97_v44  ;;  %p2096_p12 = pnand %p2095_p11, %p2089_p8 }
  0x1f   :  { %v194_v22 = vand.u32 2139095040, %v2149_v19  ;;  %v191_v24 = vand.u32 2147483647, %v2149_v19  ;;  %vm193_vm12 = vcmp.lt.s32.totalorder %v2149_v19, 0 }
  0x20   :  { %v298_v29 = vshrl.u32 %v297_v25, 23  ;;  %v2166_v51 = vand.u32 8388607, %v294_v37  ;;  %v2186_v25 = vcvt.s32.f32 %v42_v48 }
  0x21   :  { %v195_v27 = vshrl.u32 %v194_v22, 23  ;;  %v198_v32 = vand.u32 8388607, %v191_v24 }
  0x22   :  { %v1900_v33 = vadd.s32 4294967169, %v298_v29  ;;  %v302_v29 = vor.u32 8388608, %v2166_v51 }
  0x23   :  { %v1896_v31 = vadd.s32 4294967169, %v195_v27  ;;  %v199_v42 = vor.u32 8388608, %v198_v32 }
  0x24   :  { %v304_v38 = vadd.s32 1, %v1900_v33 }
  0x25   :  { %v201_v35 = vadd.s32 1, %v1896_v31  ;;  %v2171_v61 = vshll.u32 %v199_v42, 8  ;;  %v65_v42 = vmul.f32 5.9604645e-08, %v57_v52  ;;  %v2218_v52 = vshll.u32 %v302_v29, 8 }
  0x26   :  { %vm305_vm1 = vcmp.gt.s32.totalorder %v304_v38, 0  ;;  %v2003_v45 = vpop.eup %2002 }
  0x27   :  { %vm202_vm0 = vcmp.gt.s32.totalorder %v201_v35, 0  ;;  %v2161_v47 = vsel %vm305_vm1, %v304_v38, 0  ;;  %v104_v60 = vmul.f32 0.6931472, %v2003_v45  ;;  %v2005_v30 = vpop.eup %2004 }
  0x28   :  { %v203_v43 = vsel %vm202_vm0, %v201_v35, 0  ;;  %v2174_v62 = vand.u32 31, %v2161_v47  ;;  %v106_v45 = vmul.f32 0.6931472, %v2005_v30  ;;  %vm2305_vm0 = vcmp.le.f32.partialorder %v191_v24, 0.7853982 }
  0x29   :  { %v205_v46 = vand.u32 31, %v203_v43  ;;  %v204_v50 = vshrl.u32 %v203_v43, 5  ;;  %v2202_v40 = vmul.f32 -2.0, %v104_v60  ;;  %v82_v43 = vcvt.s32.f32 %v74_v49 }
  0x2a   :  { %v309_v34 = vsub.s32 32, %v2174_v62  ;;  %v311_v41 = vshll.u32 %v2117_v54, %v2174_v62 }
  0x2b   :  { %v206_v53 = vsub.s32 32, %v205_v46  ;;  %v208_v55 = vshll.u32 %v2117_v54, %v205_v46  ;;  %v211_v57 = vshll.u32 %v3134_v56, %v205_v46  ;;  %v214_v59 = vshll.u32 %v3132_v58, %v205_v46 }
  0x2c   :  { %v217_v5 = vshll.u32 %v3128_v3, %v205_v46  ;;  %v220_v8 = vshll.u32 %v3130_v6, %v205_v46  ;;  %vm223_vm2 = vcmp.lt.s32.totalorder %v204_v50, 1  ;;  %vm224_vm3 = vcmp.lt.s32.totalorder %v204_v50, 2 }
  0x2d   :  { %v207_v0 = vshrl.u32 %v2117_v54, %v206_v53  ;;  %v209_v1 = vshrl.u32 %v3134_v56, %v206_v53  ;;  %v212_v2 = vshrl.u32 %v3132_v58, %v206_v53  ;;  %v215_v4 = vshrl.u32 %v3128_v3, %v206_v53 }
  0x2e   :  { %v218_v7 = vshrl.u32 %v3130_v6, %v206_v53  ;;  %v221_v10 = vshrl.u32 %v3125_v9, %v206_v53  ;;  %vm225_vm4 = vcmp.lt.s32.totalorder %v204_v50, 3  ;;  %vm226_vm5 = vcmp.lt.s32.totalorder %v204_v50, 4 }
  0x2f   :  { %v210_v11 = vor.u32 %v209_v1, %v208_v55  ;;  %v213_v12 = vor.u32 %v212_v2, %v211_v57  ;;  %v216_v13 = vor.u32 %v215_v4, %v214_v59  ;;  %v307_v46 = vshrl.u32 %v2161_v47, 5 }
  0x30   :  { %v219_v14 = vor.u32 %v218_v7, %v217_v5  ;;  %v222_v15 = vor.u32 %v221_v10, %v220_v8  ;;  %v312_v48 = vshrl.u32 %v3134_v56, %v309_v34  ;;  %v314_v50 = vshll.u32 %v3134_v56, %v2174_v62 }
  0x31   :  { %v227_v16 = vsel %vm223_vm2, %v207_v0, %v210_v11  ;;  %v231_v17 = vsel %vm223_vm2, %v210_v11, %v213_v12  ;;  %v235_v18 = vsel %vm223_vm2, %v213_v12, %v216_v13  ;;  %v228_v20 = vsel %vm226_vm5, %v216_v13, 2102212464 }
  0x32   :  { %v232_v22 = vsel %vm226_vm5, %v219_v14, 920167782  ;;  %v236_v23 = vsel %vm226_vm5, %v222_v15, 1326507024  ;;  %v229_v26 = vsel %vm225_vm4, %v213_v12, %v228_v20  ;;  %v315_v51 = vshrl.u32 %v3132_v58, %v309_v34 }
  0x33   :  { %v233_v27 = vsel %vm225_vm4, %v216_v13, %v232_v22  ;;  %v237_v28 = vsel %vm225_vm4, %v219_v14, %v236_v23  ;;  %v230_v31 = vsel %vm224_vm3, %v227_v16, %v229_v26  ;;  %v317_v53 = vshll.u32 %v3132_v58, %v2174_v62 }
  0x34   :  { %v234_v32 = vsel %vm224_vm3, %v231_v17, %v233_v27  ;;  %v238_v33 = vsel %vm224_vm3, %v235_v18, %v237_v28  ;;  %v246_v44 = vmul.u32 %v2171_v61, %v230_v31  ;;  %v318_v55 = vshrl.u32 %v3128_v3, %v309_v34 }
  0x35   :  { %v2194_v35 = vmul.u32.u64.low %v2171_v61, %v238_v33  ;;  %v2195_v36 = vmul.u32.u64.high %v2171_v61, %v238_v33, %v2194_v35  ;;  %v2198_v38 = vmul.u32.u64.low %v2171_v61, %v234_v32  ;;  %v2199_v39 = vmul.u32.u64.high %v2171_v61, %v234_v32, %v2198_v38 }
  0x36   :  { %v400_v47 = vand.u32 2139095040, %v2176_v63  ;;  %2006 = vrsqrt.f32 %v2202_v40  ;;  %v313_v57 = vor.u32 %v312_v48, %v311_v41  ;;  %v316_v59 = vor.u32 %v315_v51, %v314_v50 }
  0x37   :  { %vm248_vm6 = vc.u32 %v2195_v36, %v2198_v38  ;;  %v249_v49 = vadd.s32 1, %v2199_v39  ;;  %v319_v60 = vor.u32 %v318_v55, %v317_v53  ;;  %v320_v0 = vshll.u32 %v3128_v3, %v2174_v62 }
  0x38   :  { %v321_v1 = vshrl.u32 %v3130_v6, %v309_v34  ;;  %v323_v2 = vshll.u32 %v3130_v6, %v2174_v62  ;;  %v2228_v5 = vmul.f32 -2.0, %v106_v45  ;;  %v324_v7 = vshrl.u32 %v3125_v9, %v309_v34 }
  0x39   :  { %v250_v61 = vsel %vm248_vm6, %v249_v49, %v2199_v39  ;;  %vm326_vm7 = vcmp.lt.s32.totalorder %v307_v46, 1  ;;  %v310_v8 = vshrl.u32 %v2117_v54, %v309_v34  ;;  %vm328_vm8 = vcmp.lt.s32.totalorder %v307_v46, 3  ;;  %v2265_v49 = vld [vmem:[#allocation2 + $0x20] sm:$0xff] }
  0x3a   :  { %v251_v4 = vadd.s32 %v250_v61, %v246_v44  ;;  %v322_v10 = vor.u32 %v321_v1, %v320_v0  ;;  %vm329_vm9 = vcmp.lt.s32.totalorder %v307_v46, 4  ;;  %v325_v12 = vor.u32 %v324_v7, %v323_v2 }
  0x3b   :  { %vm327_vm10 = vcmp.lt.s32.totalorder %v307_v46, 2  ;;  %v401_v13 = vshrl.u32 %v400_v47, 23  ;;  %v331_v14 = vsel %vm329_vm9, %v319_v60, 2102212464  ;;  %v334_v15 = vsel %vm326_vm7, %v313_v57, %v316_v59 }
  0x3c   :  { %v252_v11 = vadd.s32 536870912, %v251_v4  ;;  %v335_v16 = vsel %vm329_vm9, %v322_v10, 920167782  ;;  %v338_v62 = vsel %vm326_vm7, %v316_v59, %v319_v60  ;;  %v339_v20 = vsel %vm329_vm9, %v325_v12, 1326507024 }
  0x3d   :  { %v336_v18 = vsel %vm328_vm8, %v319_v60, %v335_v16  ;;  %2008 = vlog2.f32 %v65_v42  ;;  %v330_v22 = vsel %vm326_vm7, %v310_v8, %v313_v57  ;;  %v340_v23 = vsel %vm328_vm8, %v322_v10, %v339_v20 }
  0x3e   :  { %v253_v17 = vshrl.u32 %v252_v11, 30  ;;  %2010 = vrsqrt.f32 %v2228_v5  ;;  %v90_v26 = vadd.f32 0.5, %v82_v43  ;;  %v332_v28 = vsel %vm328_vm8, %v316_v59, %v331_v14 }
  0x3f   :  { %v337_v29 = vsel %vm327_vm10, %v334_v15, %v336_v18  ;;  %v341_v30 = vsel %vm327_vm10, %v338_v62, %v340_v23  ;;  %v1904_v33 = vadd.s32 4294967169, %v401_v13  ;;  %v58_v39 = vadd.f32 0.5, %v2186_v25 }
  0x40   :  { %v254_v27 = vshll.u32 %v253_v17, 30  ;;  %v2242_v31 = vmul.u32.u64.low %v2218_v52, %v341_v30  ;;  %v2243_v32 = vmul.u32.u64.high %v2218_v52, %v341_v30, %v2242_v31  ;;  %v2007_v34 = vpop.eup %2006  ;;  %v333_v41 = vsel %vm327_vm10, %v330_v22, %v332_v28 }
  0x41   :  { %v2250_v42 = vmul.u32.u64.low %v2218_v52, %v337_v29  ;;  %v2251_v43 = vmul.u32.u64.high %v2218_v52, %v337_v29, %v2250_v42  ;;  %v98_v45 = vmul.f32 5.9604645e-08, %v90_v26  ;;  %v397_v48 = vand.u32 2147483647, %v2176_v63 }
  0x42   :  { %v2245_v35 = vsub.s32 %v251_v4, %v254_v27  ;;  %v407_v50 = vadd.s32 1, %v1904_v33  ;;  %v349_v53 = vmul.u32 %v2218_v52, %v333_v41  ;;  %v2260_v25 = vmul.f32 5.9604645e-08, %v58_v39 }
  0x43   :  { %vm351_vm11 = vc.u32 %v2243_v32, %v2250_v42  ;;  %v128_v46 = vmul.f32 %v2007_v34, %v2202_v40  ;;  %v352_v55 = vadd.s32 1, %v2251_v43  ;;  %vm129_vm14 = vcmp.eq.f32.partialorder %v2202_v40, inf }
  0x44   :  { %v257_v44 = vsub.s32 0, %v2245_v35  ;;  %vm408_vm13 = vcmp.gt.s32.totalorder %v407_v50, 0  ;;  %v2268_v52 = vmul.f32 6.2831855, %v98_v45  ;;  %v277_v61 = vsub.s32 4, %v253_v17 }
  0x45   :  { %v409_v59 = vsel %vm408_vm13, %v407_v50, 0  ;;  %v353_v0 = vsel %vm351_vm11, %v352_v55, %v2251_v43  ;;  %v404_v1 = vand.u32 8388607, %v397_v48  ;;  %v132_v4 = vand.u32 2147483648, %v2202_v40 }
  0x46   :  { %v1897_v51 = vmin.u32 %v257_v44, %v2245_v35  ;;  %v411_v2 = vand.u32 31, %v409_v59  ;;  %v354_v8 = vadd.s32 %v353_v0, %v349_v53  ;;  %v43_v10 = vand.u32 16777215, %v2265_v49 }
  0x47   :  { %v2009_v47 = vpop.eup %2008  ;;  %v2276_v11 = vsel %vm129_vm14, %v2202_v40, %v128_v46  ;;  %v247_v12 = vadd.s32 %v2198_v38, %v2195_v36  ;;  %v139_v13 = vand.u32 2147483648, %v2228_v5  ;;  %v2288_v20 = vsel %vm193_vm12, %v277_v61, %v253_v17 }
  0x48   :  { %v259_v57 = vclz %v1897_v51  ;;  %v2011_v60 = vpop.eup %2010  ;;  %v412_v14 = vsub.s32 32, %v411_v2  ;;  %v355_v16 = vadd.s32 536870912, %v354_v8  ;;  %v2284_v62 = vmul.f32 0.6931472, %v2009_v47 }
  0x49   :  { %v2282_v15 = vmul.f32 %v2011_v60, %v2228_v5  ;;  %v405_v22 = vor.u32 8388608, %v404_v1  ;;  %v414_v23 = vshll.u32 %v2117_v54, %v411_v2  ;;  %v417_v29 = vshll.u32 %v3134_v56, %v411_v2 }
  0x4a   :  { %v1898_v7 = vadd.s32 4294967294, %v259_v57  ;;  %v2292_v27 = vshrl.u32 %v355_v16, 30  ;;  %v415_v28 = vshrl.u32 %v3134_v56, %v412_v14  ;;  %v418_v30 = vshrl.u32 %v3132_v58, %v412_v14 }
  0x4b   :  { %v423_v31 = vshll.u32 %v3128_v3, %v411_v2  ;;  %v410_v39 = vshrl.u32 %v409_v59, 5  ;;  %v420_v41 = vshll.u32 %v3132_v58, %v411_v2  ;;  %v424_v43 = vshrl.u32 %v3130_v6, %v412_v14 }
  0x4c   :  { %vm1899_vm15 = vcmp.lt.s32.totalorder %v1898_v7, 0  ;;  %v357_v34 = vshll.u32 %v2292_v27, 30  ;;  %v426_v44 = vshll.u32 %v3130_v6, %v411_v2  ;;  %v413_v46 = vshrl.u32 %v2117_v54, %v412_v14 }
  0x4d   :  { %v262_v18 = vsel %vm1899_vm15, 0, %v1898_v7  ;;  %v416_v55 = vor.u32 %v415_v28, %v414_v23  ;;  %v419_v47 = vor.u32 %v418_v30, %v417_v29  ;;  %v425_v57 = vor.u32 %v424_v43, %v423_v31 }
  0x4e   :  { %v263_v26 = vsub.s32 32, %v262_v18  ;;  %v264_v36 = vshll.u32 %v2245_v35, %v262_v18  ;;  %v267_v38 = vsub.s32 4294967266, %v262_v18  ;;  %v421_v35 = vshrl.u32 %v3128_v3, %v412_v14 }
  0x4f   :  { %v2309_v53 = vsub.s32 %v354_v8, %v357_v34  ;;  %v427_v59 = vshrl.u32 %v3125_v9, %v412_v14  ;;  %vm429_vm1 = vcmp.lt.s32.totalorder %v410_v39, 1  ;;  %vm136_vm2 = vcmp.eq.f32.partialorder %v2228_v5, inf }
  0x50   :  { %v265_v33 = vshrl.u32 %v247_v12, %v263_v26  ;;  %v268_v17 = vadd.s32 127, %v267_v38  ;;  %v422_v24 = vor.u32 %v421_v35, %v420_v41  ;;  %vm432_vm3 = vcmp.lt.s32.totalorder %v410_v39, 4 }
  0x51   :  { %v360_v0 = vsub.s32 0, %v2309_v53  ;;  %v428_v1 = vor.u32 %v427_v59, %v426_v44  ;;  %v445_v2 = vshll.u32 %v405_v22, 8  ;;  %vm431_vm4 = vcmp.lt.s32.totalorder %v410_v39, 3 }
  0x52   :  { %v266_v50 = vor.u32 %v265_v33, %v264_v36  ;;  %v269_v51 = vshll.u32 %v268_v17, 23  ;;  %v503_v12 = vand.u32 2139095040, %v2268_v52  ;;  %vm430_vm5 = vcmp.lt.s32.totalorder %v410_v39, 2 }
  0x53   :  { %v1901_v8 = vmin.u32 %v360_v0, %v2309_v53  ;;  %v433_v14 = vsel %vm429_vm1, %v413_v46, %v416_v55  ;;  %v434_v16 = vsel %vm432_vm3, %v422_v24, 2102212464  ;;  %v437_v18 = vsel %vm429_vm1, %v416_v55, %v419_v47 }
  0x54   :  { %v270_v60 = vor.u32 4788187, %v269_v51  ;;  %v273_v61 = vcvt.s32.f32 %v266_v50  ;;  %v435_v36 = vsel %vm431_vm4, %v419_v47, %v434_v16  ;;  %v438_v38 = vsel %vm432_vm3, %v425_v57, 920167782 }
  0x55   :  { %v362_v26 = vclz %v1901_v8  ;;  %vm131_vm6 = vcmp.eq.f32.partialorder %v2202_v40, 0.0  ;;  %v436_v22 = vsel %vm430_vm5, %v433_v14, %v435_v36  ;;  %v439_v28 = vsel %vm431_vm4, %v422_v24, %v438_v38 }
  0x56   :  { %v271_v7 = vand.u32 2147483647, %v270_v60  ;;  %v441_v29 = vsel %vm429_vm1, %v419_v47, %v422_v24  ;;  %v442_v30 = vsel %vm432_vm3, %v428_v1, 1326507024  ;;  %vm138_vm7 = vcmp.eq.f32.partialorder %v2228_v5, 0.0 }
  0x57   :  { %v1902_v33 = vadd.s32 4294967294, %v362_v26  ;;  %v440_v17 = vsel %vm430_vm5, %v437_v18, %v439_v28  ;;  %v443_v34 = vsel %vm431_vm4, %v425_v57, %v442_v30  ;;  %v350_v41 = vadd.s32 %v2250_v42, %v2243_v32 }
  0x58   :  { %v274_v23 = vmul.f32 %v273_v61, %v271_v7  ;;  %v444_v35 = vsel %vm430_vm5, %v441_v29, %v443_v34  ;;  %v2333_v43 = vmul.u32.u64.low %v445_v2, %v440_v17  ;;  %v2334_v44 = vmul.u32.u64.high %v445_v2, %v440_v17, %v2333_v43 }
  0x59   :  { %vm296_vm8 = vcmp.lt.s32.totalorder %v2151_v21, 0  ;;  %vm1903_vm9 = vcmp.lt.s32.totalorder %v1902_v33, 0  ;;  %v2340_v51 = vmul.u32.u64.low %v445_v2, %v444_v35  ;;  %v2341_v46 = vmul.u32.u64.high %v445_v2, %v444_v35, %v2340_v51 }
  0x5a   :  { %v275_v31 = vxor.u32 2147483648, %v274_v23  ;;  %v365_v32 = vsel %vm1903_vm9, 0, %v1902_v33  ;;  %v452_v42 = vmul.u32 %v445_v2, %v436_v22  ;;  %v504_v39 = vshrl.u32 %v503_v12, 23 }
  0x5b   :  { %v366_v47 = vsub.s32 32, %v365_v32  ;;  %v367_v57 = vshll.u32 %v2309_v53, %v365_v32  ;;  %v370_v59 = vsub.s32 4294967266, %v365_v32  ;;  %vm2349_vm10 = vcmp.le.f32.partialorder %v294_v37, 0.7853982  ;;  %v35_v37 = vld [vmem:[#allocation2 + $0x60] sm:$0xff] }
  0x5c   :  { %v276_v50 = vsel %vm193_vm12, %v275_v31, %v274_v23  ;;  %v2354_v61 = vmul.f32 -2.0, %v2284_v62  ;;  %v455_v0 = vadd.s32 1, %v2334_v44  ;;  %v500_v24 = vand.u32 2147483647, %v2268_v52 }
  0x5d   :  { %v279_v55 = vsel %vm2305_vm0, %v2149_v19, %v276_v50  ;;  %v137_v53 = vsel %vm136_vm2, %v2228_v5, %v2282_v15  ;;  %v368_v1 = vshrl.u32 %v350_v41, %v366_v47  ;;  %v371_v2 = vadd.s32 127, %v370_v59 }
  0x5e   :  { %2012 = vcosq.f32 %v279_v55  ;;  %vm454_vm11 = vc.u32 %v2341_v46, %v2333_v43  ;;  %v2367_v62 = vsel %vm2305_vm0, 0, %v2288_v20  ;;  %v380_v7 = vsub.s32 4, %v2292_v27 }
  0x5f   :  { %2014 = vsinq.f32 %v279_v55  ;;  %v456_v8 = vsel %vm454_vm11, %v455_v0, %v2334_v44  ;;  %v1908_v12 = vadd.s32 4294967169, %v504_v39  ;;  %v284_v14 = vand.u32 3, %v2367_v62 }
  0x60   :  { %v369_v16 = vor.u32 %v368_v1, %v367_v57  ;;  %v372_v15 = vshll.u32 %v371_v2, 23  ;;  %v457_v18 = vadd.s32 %v456_v8, %v452_v42  ;;  %vm283_vm12 = vweird.f32 %v2149_v19 }
  0x61   :  { %2016 = vlog2.f32 %v2260_v25  ;;  %v507_v23 = vand.u32 8388607, %v500_v24  ;;  %v510_v45 = vadd.s32 1, %v1908_v12  ;;  %v75_v20 = vand.u32 16777215, %v35_v37 }
  0x62   :  { %v2381_v26 = vsel %vm131_vm6, %v132_v4, %v2276_v11  ;;  %v373_v36 = vor.u32 4788187, %v372_v15  ;;  %v376_v38 = vcvt.s32.f32 %v369_v16  ;;  %v458_v22 = vadd.s32 536870912, %v457_v18 }
  0x63   :  { %v2387_v25 = vsel %vm138_vm7, %v139_v13, %v137_v53  ;;  %v381_v28 = vsel %vm296_vm8, %v380_v7, %v2292_v27  ;;  %2018 = vrsqrt.f32 %v2354_v61  ;;  %vm511_vm13 = vcmp.gt.s32.totalorder %v510_v45, 0 }
  0x64   :  { %vm285_vm14 = vcmp.lt.s32.totalorder %v284_v14, 2  ;;  %v374_v40 = vand.u32 2147483647, %v373_v36  ;;  %v2393_v4 = vshrl.u32 %v458_v22, 30  ;;  %v512_v11 = vsel %vm511_vm13, %v510_v45, 0 }
  0x65   :  { %v508_v29 = vor.u32 8388608, %v507_v23  ;;  %v514_v30 = vand.u32 31, %v512_v11  ;;  %v51_v31 = vcvt.s32.f32 %v43_v10  ;;  %v83_v5 = vcvt.s32.f32 %v75_v20 }
  0x66   :  { %vm289_vm15 = vcmp.eq.s32.totalorder %v284_v14, 2  ;;  %v377_v33 = vmul.f32 %v376_v38, %v374_v40  ;;  %v2401_v27 = vsel %vm2349_vm10, 0, %v381_v28  ;;  %v460_v17 = vshll.u32 %v2393_v4, 30 }
  0x67   :  { %vm286_vm0 = vcmp.eq.s32.totalorder %v284_v14, 0  ;;  %v2408_v35 = vand.u32 3, %v2401_v27  ;;  %v515_v49 = vsub.s32 32, %v514_v30  ;;  %v453_v50 = vadd.s32 %v2333_v43, %v2341_v46 }
  0x68   :  { %v2397_v13 = vpop.eup %2012  ;;  %v378_v44 = vxor.u32 2147483648, %v377_v33  ;;  %v2413_v51 = vsub.s32 %v457_v18, %v460_v17  ;;  %v2418_v32 = vshll.u32 %v508_v29, 8  ;;  %v59_v42 = vadd.f32 0.5, %v51_v31 }
  0x69   :  { %v2404_v34 = vpop.eup %2014  ;;  %v3121_v41 = vxor.u32 2147483648, %v2397_v13  ;;  %v91_v39 = vadd.f32 0.5, %v83_v5  ;;  %v517_v43 = vshll.u32 %v2117_v54, %v514_v30  ;;  %v2433_v1 = vshrl.u32 %v512_v11, 5 }
  0x6a   :  { %v3122_v10 = vxor.u32 2147483648, %v2404_v34  ;;  %v379_v57 = vsel %vm296_vm8, %v378_v44, %v377_v33  ;;  %v463_v59 = vsub.s32 0, %v2413_v51  ;;  %v518_v2 = vshrl.u32 %v3134_v56, %v515_v49 }
  0x6b   :  { %v291_v55 = vsel %vm289_vm15, %v3121_v41, %v2404_v34  ;;  %v2427_v46 = vpop.eup %2016  ;;  %v382_v53 = vsel %vm2349_vm10, %v2151_v21, %v379_v57  ;;  %v520_v8 = vshll.u32 %v3134_v56, %v514_v30  ;;  %v516_v60 = vshrl.u32 %v2117_v54, %v515_v49 }
  0x6c   :  { %v288_v47 = vsel %vm286_vm0, %v2397_v13, %v3122_v10  ;;  %2020 = vcosq.f32 %v382_v53  ;;  %v1905_v7 = vmin.u32 %v463_v59, %v2413_v51  ;;  %v67_v16 = vmul.f32 5.9604645e-08, %v59_v42 }
  0x6d   :  { %v292_v0 = vsel %vm285_vm14, %v288_v47, %v291_v55  ;;  %v2440_v12 = vpop.eup %2018  ;;  %2022 = vsinq.f32 %v382_v53  ;;  %vm392_vm1 = vcmp.eq.s32.totalorder %v2408_v35, 2  ;;  %v519_v18 = vor.u32 %v518_v2, %v517_v43 }
  0x6e   :  { %v293_v37 = vsel %vm283_vm12, nan, %v292_v0  ;;  %v465_v15 = vclz %v1905_v7  ;;  %v521_v23 = vshrl.u32 %v3132_v58, %v515_v49  ;;  %v523_v45 = vshll.u32 %v3132_v58, %v514_v30 }
  0x6f   :  { %v1015_v14 = vmul.f32 %v293_v37, %v2381_v26  ;;  %vm389_vm2 = vcmp.eq.s32.totalorder %v2408_v35, 0  ;;  %v524_v20 = vshrl.u32 %v3128_v3, %v515_v49  ;;  %v526_v36 = vshll.u32 %v3128_v3, %v514_v30 }
  0x70   :  { %v527_v38 = vshrl.u32 %v3130_v6, %v515_v49  ;;  %v529_v22 = vshll.u32 %v3130_v6, %v514_v30  ;;  %vm388_vm3 = vcmp.lt.s32.totalorder %v2408_v35, 2  ;;  %v1906_v28 = vadd.s32 4294967294, %v465_v15 }
  0x71   :  { %1863 = vst [vmem:[#allocation5] sm:$0xff] %v1015_v14  ;;  %v522_v40 = vor.u32 %v521_v23, %v520_v8  ;;  %v530_v11 = vshrl.u32 %v3125_v9, %v515_v49  ;;  %vm532_vm4 = vcmp.lt.s32.totalorder %v2433_v1, 1  ;;  %vm386_vm5 = vweird.f32 %v2151_v21 }
  0x72   :  { %v525_v29 = vor.u32 %v524_v20, %v523_v45  ;;  %v528_v31 = vor.u32 %v527_v38, %v526_v36  ;;  %vm533_vm6 = vcmp.lt.s32.totalorder %v2433_v1, 2  ;;  %v99_v5 = vmul.f32 5.9604645e-08, %v91_v39 }
  0x73   :  { %vm1907_vm7 = vcmp.lt.s32.totalorder %v1906_v28, 0  ;;  %v531_v33 = vor.u32 %v530_v11, %v529_v22  ;;  %vm534_vm8 = vcmp.lt.s32.totalorder %v2433_v1, 3  ;;  %vm535_vm9 = vcmp.lt.s32.totalorder %v2433_v1, 4 }
  0x74   :  { %v468_v30 = vsel %vm1907_vm7, 0, %v1906_v28  ;;  %v537_v17 = vsel %vm535_vm9, %v525_v29, 2102212464  ;;  %v540_v49 = vsel %vm532_vm4, %v519_v18, %v522_v40  ;;  %v541_v44 = vsel %vm535_vm9, %v528_v31, 920167782 }
  0x75   :  { %v469_v55 = vsub.s32 32, %v468_v30  ;;  %v470_v42 = vshll.u32 %v2413_v51, %v468_v30  ;;  %v473_v47 = vsub.s32 4294967266, %v468_v30  ;;  %v536_v57 = vsel %vm532_vm4, %v516_v60, %v519_v18 }
  0x76   :  { %v538_v39 = vsel %vm534_vm8, %v522_v40, %v537_v17  ;;  %v542_v59 = vsel %vm534_vm8, %v525_v29, %v541_v44  ;;  %v544_v43 = vsel %vm532_vm4, %v522_v40, %v525_v29  ;;  %v545_v0 = vsel %vm535_vm9, %v531_v33, 1326507024  ;;  %v2470_v53 = vpop.eup %2020 }
  0x77   :  { %v471_v2 = vshrl.u32 %v453_v50, %v469_v55  ;;  %v474_v37 = vadd.s32 127, %v473_v47  ;;  %v543_v51 = vsel %vm533_vm6, %v540_v49, %v542_v59  ;;  %v546_v7 = vsel %vm534_vm8, %v528_v31, %v545_v0  ;;  %v2476_v8 = vpop.eup %2022  ;;  %v28_v50 = vld [vmem:[#allocation2 + $0x28] sm:$0xff] }
  0x78   :  { %v3118_v14 = vxor.u32 2147483648, %v2470_v53  ;;  %v547_v60 = vsel %vm533_vm6, %v544_v43, %v546_v7  ;;  %v2482_v15 = vmul.u32.u64.low %v2418_v32, %v543_v51  ;;  %v2483_v18 = vmul.u32.u64.high %v2418_v32, %v543_v51, %v2482_v15 }
  0x79   :  { %v3119_v23 = vxor.u32 2147483648, %v2476_v8  ;;  %v472_v45 = vor.u32 %v471_v2, %v470_v42  ;;  %v475_v20 = vshll.u32 %v474_v37, 23  ;;  %v539_v36 = vsel %vm533_vm6, %v536_v57, %v538_v39 }
  0x7a   :  { %v394_v38 = vsel %vm392_vm1, %v3118_v14, %v2476_v8  ;;  %v2495_v22 = vmul.u32.u64.low %v2418_v32, %v547_v60  ;;  %v2496_v28 = vmul.u32.u64.high %v2418_v32, %v547_v60, %v2495_v22  ;;  %2024 = vlog2.f32 %v67_v16 }
  0x7b   :  { %v391_v40 = vsel %vm389_vm2, %v2470_v53, %v3119_v23  ;;  %v476_v11 = vor.u32 4788187, %v475_v20  ;;  %v479_v1 = vcvt.s32.f32 %v472_v45  ;;  %v44_v29 = vand.u32 16777215, %v28_v50 }
  0x7c   :  { %v395_v31 = vsel %vm388_vm3, %v391_v40, %v394_v38  ;;  %v555_v33 = vmul.u32 %v2418_v32, %v539_v36  ;;  %v558_v30 = vadd.s32 1, %v2483_v18  ;;  %v2507_v17 = vmul.f32 6.2831855, %v99_v5  ;;  %v36_v32 = vld [vmem:[#allocation2 + $0x68] sm:$0xff] }
  0x7d   :  { %v396_v16 = vsel %vm386_vm5, nan, %v395_v31  ;;  %vm399_vm10 = vcmp.lt.s32.totalorder %v2176_v63, 0  ;;  %v477_v49 = vand.u32 2147483647, %v476_v11  ;;  %vm2515_vm11 = vcmp.le.f32.partialorder %v397_v48, 0.7853982 }
  0x7e   :  { %v1016_v44 = vmul.f32 %v396_v16, %v2387_v25  ;;  %v483_v35 = vsub.s32 4, %v2393_v4  ;;  %vm557_vm13 = vc.u32 %v2496_v28, %v2482_v15  ;;  %v110_v42 = vmul.f32 0.6931472, %v2427_v46 }
  0x7f   :  { %v480_v5 = vmul.f32 %v479_v1, %v477_v49  ;;  %v559_v47 = vsel %vm557_vm13, %v558_v30, %v2483_v18  ;;  %v52_v57 = vcvt.s32.f32 %v44_v29  ;;  %vm143_vm14 = vcmp.eq.f32.partialorder %v2354_v61, inf  ;;  %v37_v1 = vld [vmem:[#allocation2 + $0x70] sm:$0xff] }
  0x80   :  { %1864 = vst [vmem:[#allocation5 + $0x8] sm:$0xff] %v1016_v44  ;;  %v560_v39 = vadd.s32 %v559_v47, %v555_v33  ;;  %v603_v48 = vand.u32 2147483647, %v2507_v17  ;;  %v606_v59 = vand.u32 2139095040, %v2507_v17  ;;  %v142_v43 = vmul.f32 %v2440_v12, %v2354_v61 }
  0x81   :  { %vm145_vm15 = vcmp.eq.f32.partialorder %v2354_v61, 0.0  ;;  %v481_v0 = vxor.u32 2147483648, %v480_v5  ;;  %v76_v2 = vand.u32 16777215, %v36_v32  ;;  %v146_v46 = vand.u32 2147483648, %v2354_v61 }
  0x82   :  { %v484_v37 = vsel %vm399_vm10, %v483_v35, %v2393_v4  ;;  %v561_v51 = vadd.s32 536870912, %v560_v39  ;;  %v607_v7 = vshrl.u32 %v606_v59, 23  ;;  %v2536_v18 = vmul.f32 -2.0, %v110_v42 }
  0x83   :  { %v482_v60 = vsel %vm399_vm10, %v481_v0, %v480_v5  ;;  %v60_v50 = vadd.f32 0.5, %v52_v57  ;;  %v84_v45 = vcvt.s32.f32 %v76_v2  ;;  %v610_v4 = vand.u32 8388607, %v603_v48 }
  0x84   :  { %v2025_v12 = vpop.eup %2024  ;;  %v485_v20 = vsel %vm2515_vm11, %v2176_v63, %v482_v60  ;;  %v2541_v36 = vshrl.u32 %v561_v51, 30  ;;  %v1912_v38 = vadd.s32 4294967169, %v607_v7  ;;  %v144_v22 = vsel %vm143_vm14, %v2354_v61, %v142_v43 }
  0x85   :  { %v2550_v40 = vsel %vm2515_vm11, 0, %v484_v37  ;;  %2026 = vcosq.f32 %v485_v20  ;;  %v92_v11 = vadd.f32 0.5, %v84_v45  ;;  %v112_v30 = vmul.f32 0.6931472, %v2025_v12 }
  0x86   :  { %2028 = vsinq.f32 %v485_v20  ;;  %v490_v29 = vand.u32 3, %v2550_v40  ;;  %v563_v31 = vshll.u32 %v2541_v36, 30  ;;  %v613_v33 = vadd.s32 1, %v1912_v38 }
  0x87   :  { %v68_v16 = vmul.f32 5.9604645e-08, %v60_v50  ;;  %v100_v49 = vmul.f32 5.9604645e-08, %v92_v11  ;;  %v611_v35 = vor.u32 8388608, %v610_v4  ;;  %v77_v32 = vand.u32 16777215, %v37_v1 }
  0x88   :  { %v2554_v44 = vsub.s32 %v560_v39, %v563_v31  ;;  %vm614_vm0 = vcmp.gt.s32.totalorder %v613_v33, 0  ;;  %v2558_v55 = vsel %vm145_vm15, %v146_v46, %v144_v22  ;;  %2030 = vrsqrt.f32 %v2536_v18 }
  0x89   :  { %v615_v5 = vsel %vm614_vm0, %v613_v33, 0  ;;  %vm489_vm1 = vweird.f32 %v2176_v63  ;;  %vm491_vm2 = vcmp.lt.s32.totalorder %v490_v29, 2  ;;  %v2563_v57 = vmul.f32 6.2831855, %v100_v49 }
  0x8a   :  { %v566_v42 = vsub.s32 0, %v2554_v44  ;;  %v617_v47 = vand.u32 31, %v615_v5  ;;  %vm492_vm3 = vcmp.eq.s32.totalorder %v490_v29, 0  ;;  %vm495_vm4 = vcmp.eq.s32.totalorder %v490_v29, 2 }
  0x8b   :  { %v556_v39 = vadd.s32 %v2482_v15, %v2496_v28  ;;  %v2567_v59 = vmul.f32 -2.0, %v112_v30  ;;  %v2570_v43 = vshll.u32 %v611_v35, 8  ;;  %2032 = vlog2.f32 %v68_v16 }
  0x8c   :  { %v1909_v61 = vmin.u32 %v566_v42, %v2554_v44  ;;  %v85_v0 = vcvt.s32.f32 %v77_v32  ;;  %v2572_v2 = vshrl.u32 %v615_v5, 5  ;;  %v618_v46 = vsub.s32 32, %v617_v47 }
  0x8d   :  { %v620_v37 = vshll.u32 %v2117_v54, %v617_v47  ;;  %v623_v51 = vshll.u32 %v3134_v56, %v617_v47  ;;  %v626_v60 = vshll.u32 %v3132_v58, %v617_v47  ;;  %v629_v15 = vshll.u32 %v3128_v3, %v617_v47 }
  0x8e   :  { %v568_v7 = vclz %v1909_v61  ;;  %v709_v28 = vand.u32 2139095040, %v2563_v57  ;;  %v621_v45 = vshrl.u32 %v3134_v56, %v618_v46  ;;  %v624_v12 = vshrl.u32 %v3132_v58, %v618_v46 }
  0x8f   :  { %v2579_v50 = vpop.eup %2026  ;;  %v627_v20 = vshrl.u32 %v3128_v3, %v618_v46  ;;  %v632_v38 = vshll.u32 %v3130_v6, %v617_v47  ;;  %v630_v1 = vshrl.u32 %v3130_v6, %v618_v46  ;;  %v633_v31 = vshrl.u32 %v3125_v9, %v618_v46 }
  0x90   :  { %v2585_v4 = vpop.eup %2028  ;;  %v3116_v22 = vxor.u32 2147483648, %v2579_v50  ;;  %v1910_v11 = vadd.s32 4294967294, %v568_v7  ;;  %v619_v30 = vshrl.u32 %v2117_v54, %v618_v46  ;;  %v622_v16 = vor.u32 %v621_v45, %v620_v37 }
  0x91   :  { %v3117_v33 = vxor.u32 2147483648, %v2585_v4  ;;  %v625_v49 = vor.u32 %v624_v12, %v623_v51  ;;  %v628_v32 = vor.u32 %v627_v20, %v626_v60  ;;  %v631_v5 = vor.u32 %v630_v1, %v629_v15 }
  0x92   :  { %v497_v35 = vsel %vm495_vm4, %v3116_v22, %v2585_v4  ;;  %vm1911_vm6 = vcmp.lt.s32.totalorder %v1910_v11, 0  ;;  %v2031_v42 = vpop.eup %2030  ;;  %v634_v7 = vor.u32 %v633_v31, %v632_v38  ;;  %vm635_vm7 = vcmp.lt.s32.totalorder %v2572_v2, 1 }
  0x93   :  { %v494_v47 = vsel %vm492_vm3, %v2579_v50, %v3117_v33  ;;  %v571_v61 = vsel %vm1911_vm6, 0, %v1910_v11  ;;  %vm636_vm8 = vcmp.lt.s32.totalorder %v2572_v2, 2  ;;  %vm637_vm9 = vcmp.lt.s32.totalorder %v2572_v2, 3 }
  0x94   :  { %v498_v46 = vsel %vm491_vm2, %v494_v47, %v497_v35  ;;  %v572_v37 = vsub.s32 32, %v571_v61  ;;  %v573_v51 = vshll.u32 %v2554_v44, %v571_v61  ;;  %v576_v45 = vsub.s32 4294967266, %v571_v61 }
  0x95   :  { %v499_v60 = vsel %vm489_vm1, nan, %v498_v46  ;;  %vm638_vm10 = vcmp.lt.s32.totalorder %v2572_v2, 4  ;;  %v2033_v15 = vpop.eup %2032  ;;  %v639_v44 = vsel %vm635_vm7, %v619_v30, %v622_v16  ;;  %v643_v1 = vsel %vm635_vm7, %v622_v16, %v625_v49 }
  0x96   :  { %v1017_v12 = vmul.f32 %v499_v60, %v2558_v55  ;;  %v574_v20 = vshrl.u32 %v556_v39, %v572_v37  ;;  %v577_v38 = vadd.s32 127, %v576_v45  ;;  %v640_v29 = vsel %vm638_vm10, %v628_v32, 2102212464  ;;  %v29_v60 = vld [vmem:[#allocation2 + $0x30] sm:$0xff] }
  0x97   :  { %v641_v11 = vsel %vm637_vm9, %v625_v49, %v640_v29  ;;  %v644_v31 = vsel %vm638_vm10, %v631_v5, 920167782  ;;  %v647_v61 = vsel %vm635_vm7, %v625_v49, %v628_v32  ;;  %v586_v30 = vsub.s32 4, %v2541_v36 }
  0x98   :  { %1865 = vst [vmem:[#allocation5 + $0x10] sm:$0xff] %v1017_v12  ;;  %v575_v35 = vor.u32 %v574_v20, %v573_v51  ;;  %v578_v47 = vshll.u32 %v577_v38, 23  ;;  %v645_v39 = vsel %vm637_vm9, %v628_v32, %v644_v31  ;;  %2034 = vrsqrt.f32 %v2567_v59 }
  0x99   :  { %v646_v46 = vsel %vm636_vm8, %v643_v1, %v645_v39  ;;  %v648_v16 = vsel %vm638_vm10, %v634_v7, 1326507024  ;;  %v93_v12 = vadd.f32 0.5, %v85_v0  ;;  %v642_v49 = vsel %vm636_vm8, %v639_v44, %v641_v11 }
  0x9a   :  { %v579_v37 = vor.u32 4788187, %v578_v47  ;;  %v582_v45 = vcvt.s32.f32 %v575_v35  ;;  %v649_v51 = vsel %vm637_vm9, %v631_v5, %v648_v16  ;;  %v710_v31 = vshrl.u32 %v709_v28, 23 }
  0x9b   :  { %v650_v32 = vsel %vm636_vm8, %v647_v61, %v649_v51  ;;  %v2636_v20 = vmul.u32.u64.low %v2570_v43, %v646_v46  ;;  %v2637_v38 = vmul.u32.u64.high %v2570_v43, %v646_v46, %v2636_v20  ;;  %v149_v5 = vmul.f32 %v2031_v42, %v2536_v18 }
  0x9c   :  { %v580_v29 = vand.u32 2147483647, %v579_v37  ;;  %v2641_v7 = vmul.u32.u64.low %v2570_v43, %v650_v32  ;;  %v2642_v1 = vmul.u32.u64.high %v2570_v43, %v650_v32, %v2641_v7  ;;  %vm150_vm11 = vcmp.eq.f32.partialorder %v2536_v18, inf }
  0x9d   :  { %vm502_vm13 = vcmp.lt.s32.totalorder %v2268_v52, 0  ;;  %v45_v0 = vand.u32 16777215, %v29_v60  ;;  %v658_v11 = vmul.u32 %v2570_v43, %v642_v49  ;;  %v1916_v35 = vadd.s32 4294967169, %v710_v31  ;;  %v2671_v49 = vld [vmem:[#allocation2 + $0x38] sm:$0xff] }
  0x9e   :  { %v583_v2 = vmul.f32 %v582_v45, %v580_v29  ;;  %v587_v44 = vsel %vm502_vm13, %v586_v30, %v2541_v36  ;;  %vm152_vm14 = vcmp.eq.f32.partialorder %v2536_v18, 0.0  ;;  %vm501_vm15 = vcmp.le.f32.partialorder %v500_v24, 0.7853982 }
  0x9f   :  { %v661_v28 = vadd.s32 1, %v2637_v38  ;;  %v153_v42 = vand.u32 2147483648, %v2536_v18  ;;  %vm660_vm0 = vc.u32 %v2642_v1, %v2636_v20  ;;  %v101_v39 = vmul.f32 5.9604645e-08, %v93_v12 }
  0xa0   :  { %v584_v47 = vxor.u32 2147483648, %v583_v2  ;;  %v151_v36 = vsel %vm150_vm11, %v2536_v18, %v149_v5  ;;  %v2661_v43 = vsel %vm501_vm15, 0, %v587_v44  ;;  %v716_v30 = vadd.s32 1, %v1916_v35 }
  0xa1   :  { %v662_v61 = vsel %vm660_vm0, %v661_v28, %v2637_v38  ;;  %v2667_v46 = vand.u32 3, %v2661_v43  ;;  %v53_v37 = vcvt.s32.f32 %v45_v0  ;;  %v114_v60 = vmul.f32 0.6931472, %v2033_v15 }
  0xa2   :  { %v585_v24 = vsel %vm502_vm13, %v584_v47, %v583_v2  ;;  %v663_v16 = vadd.s32 %v662_v61, %v658_v11  ;;  %v2035_v45 = vpop.eup %2034  ;;  %v3120_v12 = vand.u32 2147483647, %v2563_v57  ;;  %vm717_vm2 = vcmp.gt.s32.totalorder %v716_v30, 0 }
  0xa3   :  { %v588_v51 = vsel %vm501_vm15, %v2268_v52, %v585_v24  ;;  %v718_v38 = vsel %vm717_vm2, %v716_v30, 0  ;;  %v2673_v29 = vmul.f32 6.2831855, %v101_v39  ;;  %v2677_v31 = vsel %vm152_vm14, %v153_v42, %v151_v36 }
  0xa4   :  { %2036 = vcosq.f32 %v588_v51  ;;  %v664_v32 = vadd.s32 536870912, %v663_v16  ;;  %v720_v7 = vand.u32 31, %v718_v38  ;;  %v2681_v0 = vadd.f32 0.5, %v53_v37 }
  0xa5   :  { %2038 = vsinq.f32 %v588_v51  ;;  %v46_v15 = vand.u32 16777215, %v2671_v49  ;;  %v2685_v2 = vmul.f32 %v2035_v45, %v2567_v59  ;;  %v2687_v44 = vmul.f32 -2.0, %v114_v60 }
  0xa6   :  { %v2679_v5 = vshrl.u32 %v664_v32, 30  ;;  %v713_v11 = vand.u32 8388607, %v3120_v12  ;;  %v721_v35 = vsub.s32 32, %v720_v7  ;;  %vm594_vm3 = vcmp.lt.s32.totalorder %v2667_v46, 2 }
  0xa7   :  { %v719_v28 = vshrl.u32 %v718_v38, 5  ;;  %v723_v42 = vshll.u32 %v2117_v54, %v720_v7  ;;  %v812_v47 = vand.u32 2139095040, %v2673_v29  ;;  %vm592_vm4 = vweird.f32 %v2268_v52 }
  0xa8   :  { %v666_v18 = vshll.u32 %v2679_v5, 30  ;;  %v724_v39 = vshrl.u32 %v3134_v56, %v721_v35  ;;  %v726_v36 = vshll.u32 %v3134_v56, %v720_v7  ;;  %v727_v61 = vshrl.u32 %v3132_v58, %v721_v35 }
  0xa9   :  { %v732_v30 = vshll.u32 %v3128_v3, %v720_v7  ;;  %v729_v37 = vshll.u32 %v3132_v58, %v720_v7  ;;  %v730_v45 = vshrl.u32 %v3128_v3, %v721_v35  ;;  %v733_v51 = vshrl.u32 %v3130_v6, %v721_v35 }
  0xaa   :  { %v2700_v24 = vsub.s32 %v663_v16, %v666_v18  ;;  %vm595_vm6 = vcmp.eq.s32.totalorder %v2667_v46, 0  ;;  %vm598_vm7 = vcmp.eq.s32.totalorder %v2667_v46, 2  ;;  %v659_v60 = vadd.s32 %v2636_v20, %v2642_v1 }
  0xab   :  { %2040 = vrsqrt.f32 %v2687_v44  ;;  %v714_v38 = vor.u32 8388608, %v713_v11  ;;  %v722_v16 = vshrl.u32 %v2117_v54, %v721_v35  ;;  %v725_v18 = vor.u32 %v724_v39, %v723_v42 }
  0xac   :  { %v669_v32 = vsub.s32 0, %v2700_v24  ;;  %v728_v22 = vor.u32 %v727_v61, %v726_v36  ;;  %v734_v33 = vor.u32 %v733_v51, %v732_v30  ;;  %v735_v14 = vshll.u32 %v3130_v6, %v720_v7 }
  0xad   :  { %v736_v23 = vshrl.u32 %v3125_v9, %v721_v35  ;;  %vm157_vm8 = vcmp.eq.f32.partialorder %v2567_v59, inf  ;;  %v731_v1 = vor.u32 %v730_v45, %v729_v37  ;;  %vm738_vm9 = vcmp.lt.s32.totalorder %v719_v28, 1 }
  0xae   :  { %v2714_v12 = vpop.eup %2036  ;;  %v1913_v20 = vmin.u32 %v669_v32, %v2700_v24  ;;  %v813_v41 = vshrl.u32 %v812_v47, 23  ;;  %vm740_vm10 = vcmp.lt.s32.totalorder %v719_v28, 3  ;;  %vm741_vm11 = vcmp.lt.s32.totalorder %v719_v28, 4 }
  0xaf   :  { %v2718_v10 = vpop.eup %2038  ;;  %v3123_v11 = vxor.u32 2147483648, %v2714_v12  ;;  %v737_v42 = vor.u32 %v736_v23, %v735_v14  ;;  %vm739_vm13 = vcmp.lt.s32.totalorder %v719_v28, 2  ;;  %v743_v35 = vsel %vm741_vm11, %v731_v1, 2102212464 }
  0xb0   :  { %v3124_v7 = vxor.u32 2147483648, %v2718_v10  ;;  %v671_v39 = vclz %v1913_v20  ;;  %v742_v47 = vsel %vm738_vm9, %v722_v16, %v725_v18  ;;  %v746_v61 = vsel %vm738_vm9, %v725_v18, %v728_v22 }
  0xb1   :  { %v600_v36 = vsel %vm598_vm7, %v3123_v11, %v2718_v10  ;;  %v747_v30 = vsel %vm741_vm11, %v734_v33, 920167782  ;;  %v744_v37 = vsel %vm740_vm10, %v728_v22, %v743_v35  ;;  %v750_v32 = vsel %vm738_vm9, %v728_v22, %v731_v1 }
  0xb2   :  { %v597_v14 = vsel %vm595_vm6, %v2714_v12, %v3124_v7  ;;  %v1914_v23 = vadd.s32 4294967294, %v671_v39  ;;  %v748_v45 = vsel %vm740_vm10, %v731_v1, %v747_v30  ;;  %v751_v16 = vsel %vm741_vm11, %v737_v42, 1326507024 }
  0xb3   :  { %v601_v51 = vsel %vm594_vm3, %v597_v14, %v600_v36  ;;  %v754_v20 = vshll.u32 %v714_v38, 8  ;;  %v749_v11 = vsel %vm739_vm13, %v746_v61, %v748_v45  ;;  %v752_v7 = vsel %vm740_vm10, %v734_v33, %v751_v16 }
  0xb4   :  { %v602_v18 = vsel %vm592_vm4, nan, %v601_v51  ;;  %vm1915_vm14 = vcmp.lt.s32.totalorder %v1914_v23, 0  ;;  %v745_v30 = vsel %vm739_vm13, %v742_v47, %v744_v37  ;;  %v753_v46 = vsel %vm739_vm13, %v750_v32, %v752_v7 }
  0xb5   :  { %v2041_v39 = vpop.eup %2040  ;;  %v1018_v35 = vmul.f32 %v602_v18, %v2677_v31  ;;  %v674_v9 = vsel %vm1915_vm14, 0, %v1914_v23  ;;  %v1920_v1 = vadd.s32 4294967169, %v813_v41  ;;  %v158_v28 = vsel %vm157_vm8, %v2567_v59, %v2685_v2 }
  0xb6   :  { %v675_v36 = vsub.s32 32, %v674_v9  ;;  %v676_v22 = vshll.u32 %v2700_v24, %v674_v9  ;;  %v679_v38 = vsub.s32 4294967266, %v674_v9  ;;  %vm159_vm15 = vcmp.eq.f32.partialorder %v2567_v59, 0.0 }
  0xb7   :  { %1866 = vst [vmem:[#allocation5 + $0x18] sm:$0xff] %v1018_v35  ;;  %v2747_v42 = vmul.u32.u64.low %v754_v20, %v753_v46  ;;  %v2748_v14 = vmul.u32.u64.high %v754_v20, %v753_v46, %v2747_v42  ;;  %v2750_v61 = vmul.u32.u64.low %v754_v20, %v749_v11  ;;  %v2751_v45 = vmul.u32.u64.high %v754_v20, %v749_v11, %v2750_v61  ;;  %v38_v11 = vld [vmem:[#allocation2 + $0x78] sm:$0xff] }
  0xb8   :  { %v677_v33 = vshrl.u32 %v659_v60, %v675_v36  ;;  %v680_v51 = vadd.s32 127, %v679_v38  ;;  %v160_v9 = vand.u32 2147483648, %v2567_v59  ;;  %v819_v41 = vadd.s32 1, %v1920_v1 }
  0xb9   :  { %v761_v47 = vmul.u32 %v754_v20, %v745_v30  ;;  %v69_v23 = vmul.f32 5.9604645e-08, %v2681_v0  ;;  %vm763_vm0 = vc.u32 %v2748_v14, %v2750_v61  ;;  %v764_v60 = vadd.s32 1, %v2751_v45 }
  0xba   :  { %v678_v24 = vor.u32 %v677_v33, %v676_v22  ;;  %v681_v7 = vshll.u32 %v680_v51, 23  ;;  %v3127_v37 = vand.u32 2147483647, %v2673_v29  ;;  %v54_v2 = vcvt.s32.f32 %v46_v15 }
  0xbb   :  { %vm605_vm2 = vcmp.lt.s32.totalorder %v2507_v17, 0  ;;  %vm820_vm3 = vcmp.gt.s32.totalorder %v819_v41, 0  ;;  %vm2770_vm6 = vcmp.le.f32.partialorder %v603_v48, 0.7853982  ;;  %v765_v20 = vsel %vm763_vm0, %v764_v60, %v2751_v45 }
  0xbc   :  { %v682_v32 = vor.u32 4788187, %v681_v7  ;;  %v685_v16 = vcvt.s32.f32 %v678_v24  ;;  %v821_v18 = vsel %vm820_vm3, %v819_v41, 0  ;;  %v78_v35 = vand.u32 16777215, %v38_v11 }
  0xbd   :  { %v2777_v30 = vsel %vm159_vm15, %v160_v9, %v158_v28  ;;  %v766_v15 = vadd.s32 %v765_v20, %v761_v47  ;;  %v823_v46 = vand.u32 31, %v821_v18  ;;  %v167_v36 = vand.u32 2147483648, %v2687_v44 }
  0xbe   :  { %v683_v49 = vand.u32 2147483647, %v682_v32  ;;  %2042 = vlog2.f32 %v69_v23  ;;  %v816_v48 = vand.u32 8388607, %v3127_v37  ;;  %v2782_v22 = vadd.f32 0.5, %v54_v2 }
  0xbf   :  { %v689_v1 = vsub.s32 4, %v2679_v5  ;;  %v767_v42 = vadd.s32 536870912, %v766_v15  ;;  %v824_v45 = vsub.s32 32, %v823_v46  ;;  %v2786_v59 = vmul.f32 %v2041_v39, %v2687_v44 }
  0xc0   :  { %v686_v38 = vmul.f32 %v685_v16, %v683_v49  ;;  %v822_v33 = vshrl.u32 %v821_v18, 5  ;;  %v826_v51 = vshll.u32 %v2117_v54, %v823_v46  ;;  %v829_v28 = vshll.u32 %v3134_v56, %v823_v46 }
  0xc1   :  { %v2790_v41 = vshrl.u32 %v767_v42, 30  ;;  %v827_v24 = vshrl.u32 %v3134_v56, %v824_v45  ;;  %v832_v7 = vshll.u32 %v3132_v58, %v823_v46  ;;  %v830_v47 = vshrl.u32 %v3132_v58, %v824_v45 }
  0xc2   :  { %v687_v9 = vxor.u32 2147483648, %v686_v38  ;;  %v833_v23 = vshrl.u32 %v3128_v3, %v824_v45  ;;  %v835_v11 = vshll.u32 %v3128_v3, %v823_v46  ;;  %v836_v39 = vshrl.u32 %v3130_v6, %v824_v45 }
  0xc3   :  { %v769_v2 = vshll.u32 %v2790_v41, 30  ;;  %v838_v32 = vshll.u32 %v3130_v6, %v823_v46  ;;  %v3144_v16 = vmov 1326507024   ;;  %v690_v18 = vsel %vm605_vm2, %v689_v1, %v2679_v5 }
  0xc4   :  { %v688_v60 = vsel %vm605_vm2, %v687_v9, %v686_v38  ;;  %v839_v20 = vshrl.u32 %v3144_v16, %v824_v45  ;;  %v817_v42 = vor.u32 8388608, %v816_v48  ;;  %v86_v37 = vcvt.s32.f32 %v78_v35 }
  0xc5   :  { %v691_v49 = vsel %vm2770_vm6, %v2507_v17, %v688_v60  ;;  %v2809_v3 = vsub.s32 %v766_v15, %v769_v2  ;;  %v825_v38 = vshrl.u32 %v2117_v54, %v824_v45  ;;  %v828_v9 = vor.u32 %v827_v24, %v826_v51 }
  0xc6   :  { %2044 = vcosq.f32 %v691_v49  ;;  %v831_v46 = vor.u32 %v830_v47, %v829_v28  ;;  %v834_v6 = vor.u32 %v833_v23, %v832_v7  ;;  %v837_v58 = vor.u32 %v836_v39, %v835_v11 }
  0xc7   :  { %2046 = vsinq.f32 %v691_v49  ;;  %v2814_v56 = vsel %vm2770_vm6, 0, %v690_v18  ;;  %v772_v5 = vsub.s32 0, %v2809_v3  ;;  %v840_v1 = vor.u32 %v839_v20, %v838_v32 }
  0xc8   :  { %vm841_vm7 = vcmp.lt.s32.totalorder %v822_v33, 1  ;;  %v2043_v48 = vpop.eup %2042  ;;  %v696_v35 = vand.u32 3, %v2814_v56  ;;  %vm843_vm8 = vcmp.lt.s32.totalorder %v822_v33, 3  ;;  %vm844_vm9 = vcmp.lt.s32.totalorder %v822_v33, 4 }
  0xc9   :  { %v857_v15 = vshll.u32 %v817_v42, 8  ;;  %v1917_v45 = vmin.u32 %v772_v5, %v2809_v3  ;;  %vm842_vm10 = vcmp.lt.s32.totalorder %v822_v33, 2  ;;  %v845_v51 = vsel %vm841_vm7, %v825_v38, %v828_v9 }
  0xca   :  { %v94_v28 = vadd.f32 0.5, %v86_v37  ;;  %vm695_vm11 = vweird.f32 %v2507_v17  ;;  %v846_v0 = vsel %vm844_vm9, %v834_v6, 2102212464  ;;  %v849_v24 = vsel %vm841_vm7, %v828_v9, %v831_v46 }
  0xcb   :  { %v850_v7 = vsel %vm844_vm9, %v837_v58, 920167782  ;;  %v853_v47 = vsel %vm841_vm7, %v831_v46, %v834_v6  ;;  %vm164_vm13 = vcmp.eq.f32.partialorder %v2687_v44, inf  ;;  %v774_v23 = vclz %v1917_v45 }
  0xcc   :  { %v847_v11 = vsel %vm843_vm8, %v831_v46, %v846_v0  ;;  %v851_v39 = vsel %vm843_vm8, %v834_v6, %v850_v7  ;;  %v854_v60 = vsel %vm844_vm9, %v840_v1, 1326507024  ;;  %v1116_v20 = vadd.s32 3, %v2367_v62 }
  0xcd   :  { %v848_v2 = vsel %vm842_vm10, %v845_v51, %v847_v11  ;;  %v852_v32 = vsel %vm842_vm10, %v849_v24, %v851_v39  ;;  %v855_v37 = vsel %vm843_vm8, %v837_v58, %v854_v60  ;;  %v1918_v18 = vadd.s32 4294967294, %v774_v23 }
  0xce   :  { %v856_v49 = vsel %vm842_vm10, %v853_v47, %v855_v37  ;;  %v2828_v42 = vmul.u32.u64.low %v857_v15, %v852_v32  ;;  %v2829_v38 = vmul.u32.u64.high %v857_v15, %v852_v32, %v2828_v42  ;;  %vm697_vm14 = vcmp.lt.s32.totalorder %v696_v35, 2 }
  0xcf   :  { %v2832_v9 = vmul.u32.u64.low %v857_v15, %v856_v49  ;;  %v2833_v46 = vmul.u32.u64.high %v857_v15, %v856_v49, %v2832_v9  ;;  %v102_v6 = vmul.f32 5.9604645e-08, %v94_v28  ;;  %vm698_vm15 = vcmp.eq.s32.totalorder %v696_v35, 0 }
  0xd0   :  { %v2835_v5 = vpop.eup %2044  ;;  %vm701_vm0 = vcmp.eq.s32.totalorder %v696_v35, 2  ;;  %v762_v58 = vadd.s32 %v2750_v61, %v2748_v14  ;;  %vm1919_vm2 = vcmp.lt.s32.totalorder %v1918_v18, 0  ;;  %vm166_vm3 = vcmp.eq.f32.partialorder %v2687_v44, 0.0 }
  0xd1   :  { %v2839_v62 = vpop.eup %2046  ;;  %v702_v33 = vxor.u32 2147483648, %v2835_v5  ;;  %v777_v1 = vsel %vm1919_vm2, 0, %v1918_v18  ;;  %v864_v45 = vmul.u32 %v857_v15, %v848_v2  ;;  %v1117_v51 = vand.u32 3, %v1116_v20 }
  0xd2   :  { %v699_v0 = vxor.u32 2147483648, %v2839_v62  ;;  %vm708_vm6 = vcmp.lt.s32.totalorder %v2563_v57, 0  ;;  %v778_v28 = vsub.s32 32, %v777_v1  ;;  %v779_v24 = vshll.u32 %v2809_v3, %v777_v1 }
  0xd3   :  { %v782_v7 = vsub.s32 4294967266, %v777_v1  ;;  %v703_v14 = vsel %vm701_vm0, %v702_v33, %v2839_v62  ;;  %vm866_vm7 = vc.u32 %v2833_v46, %v2828_v42  ;;  %v867_v61 = vadd.s32 1, %v2829_v38 }
  0xd4   :  { %v2853_v15 = vmul.f32 6.2831855, %v102_v6  ;;  %v700_v47 = vsel %vm698_vm15, %v2835_v5, %v699_v0  ;;  %v780_v23 = vshrl.u32 %v762_v58, %v778_v28  ;;  %v116_v11 = vmul.f32 0.6931472, %v2043_v48 }
  0xd5   :  { %v783_v3 = vadd.s32 127, %v782_v7  ;;  %v704_v39 = vsel %vm697_vm14, %v700_v47, %v703_v14  ;;  %v868_v60 = vsel %vm866_vm7, %v867_v61, %v2829_v38  ;;  %vm1119_vm8 = vcmp.eq.s32.totalorder %v1117_v51, 0 }
  0xd6   :  { %v912_v2 = vand.u32 2147483647, %v2853_v15  ;;  %v705_v32 = vsel %vm695_vm11, nan, %v704_v39  ;;  %v781_v37 = vor.u32 %v780_v23, %v779_v24  ;;  %v869_v18 = vadd.s32 %v868_v60, %v864_v45 }
  0xd7   :  { %v784_v20 = vshll.u32 %v783_v3, 23  ;;  %v1019_v49 = vmul.f32 %v705_v32, %v2777_v30  ;;  %v165_v48 = vsel %vm164_vm13, %v2687_v44, %v2786_v59  ;;  %v792_v35 = vsub.s32 4, %v2790_v41 }
  0xd8   :  { %v915_v38 = vand.u32 2139095040, %v2853_v15  ;;  %v788_v6 = vcvt.s32.f32 %v781_v37  ;;  %v870_v58 = vadd.s32 536870912, %v869_v18  ;;  %vm1118_vm9 = vcmp.lt.s32.totalorder %v1117_v51, 2 }
  0xd9   :  { %v785_v9 = vor.u32 4788187, %v784_v20  ;;  %1867 = vst [vmem:[#allocation5 + $0x20] sm:$0xff] %v1019_v49  ;;  %v2871_v1 = vmul.f32 -2.0, %v116_v11  ;;  %v3145_v45 = vxor.u32 2147483648, %v2404_v34  ;;  %vm1122_vm10 = vcmp.eq.s32.totalorder %v1117_v51, 2 }
  0xda   :  { %v916_v28 = vshrl.u32 %v915_v38, 23  ;;  %v2877_v59 = vshrl.u32 %v870_v58, 30  ;;  %v919_v14 = vand.u32 8388607, %v912_v2  ;;  %v3146_v61 = vxor.u32 2147483648, %v2397_v13 }
  0xdb   :  { %v1121_v24 = vsel %vm1119_vm8, %v2397_v13, %v3145_v45  ;;  %v786_v7 = vand.u32 2147483647, %v785_v9  ;;  %v793_v23 = vsel %vm708_vm6, %v792_v35, %v2790_v41  ;;  %v70_v3 = vmul.f32 5.9604645e-08, %v2782_v22 }
  0xdc   :  { %v1124_v47 = vsel %vm1122_vm10, %v3146_v61, %v2404_v34  ;;  %v1924_v11 = vadd.s32 4294967169, %v916_v28  ;;  %v2892_v51 = vsel %vm166_vm3, %v167_v36, %v165_v48  ;;  %v3147_v60 = vand.u32 2147483647, %v2563_v57 }
  0xdd   :  { %v1125_v39 = vsel %vm1118_vm9, %v1121_v24, %v1124_v47  ;;  %v789_v13 = vmul.f32 %v788_v6, %v786_v7  ;;  %v872_v34 = vshll.u32 %v2877_v59, 30  ;;  %2048 = vrsqrt.f32 %v2871_v1 }
  0xde   :  { %vm2896_vm13 = vcmp.le.f32.partialorder %v3147_v60, 0.7853982  ;;  %v922_v22 = vadd.s32 1, %v1924_v11  ;;  %v1126_v41 = vsel %vm283_vm12, nan, %v1125_v39  ;;  %v1220_v37 = vadd.s32 3, %v2401_v27 }
  0xdf   :  { %v790_v44 = vxor.u32 2147483648, %v789_v13  ;;  %v2907_v36 = vsel %vm2896_vm13, 0, %v793_v23  ;;  %v2909_v20 = vsub.s32 %v869_v18, %v872_v34  ;;  %v920_v49 = vor.u32 8388608, %v919_v14 }
  0xe0   :  { %v2912_v48 = vand.u32 3, %v2907_v36  ;;  %2050 = vlog2.f32 %v70_v3  ;;  %vm923_vm14 = vcmp.gt.s32.totalorder %v922_v22, 0  ;;  %v1855_v35 = vmul.f32 %v1126_v41, %v2381_v26 }
  0xe1   :  { %v791_v19 = vsel %vm708_vm6, %v790_v44, %v789_v13  ;;  %v865_v27 = vadd.s32 %v2828_v42, %v2833_v46  ;;  %v875_v38 = vsub.s32 0, %v2909_v20  ;;  %v924_v9 = vsel %vm923_vm14, %v922_v22, 0 }
  0xe2   :  { %v794_v18 = vsel %vm2896_vm13, %v2563_v57, %v791_v19  ;;  %v926_v6 = vand.u32 31, %v924_v9  ;;  %1871 = vst [vmem:[#allocation5 + $0x40] sm:$0xff] %v1855_v35  ;;  %v2923_v58 = vand.u32 3, %v1220_v37  ;;  %v2926_v28 = vadd.s32 3, %v2550_v40 }
  0xe3   :  { %2052 = vcosq.f32 %v794_v18  ;;  %v1921_v26 = vmin.u32 %v875_v38, %v2909_v20  ;;  %v895_v45 = vsub.s32 4, %v2877_v59  ;;  %v2930_v42 = vshll.u32 %v920_v49, 8 }
  0xe4   :  { %2054 = vsinq.f32 %v794_v18  ;;  %v925_v46 = vshrl.u32 %v924_v9, 5  ;;  %v927_v24 = vsub.s32 32, %v926_v6  ;;  %v929_v7 = vshll.u32 %v2117_v54, %v926_v6 }
  0xe5   :  { %vm804_vm12 = vcmp.eq.s32.totalorder %v2912_v48, 2  ;;  %v877_v14 = vclz %v1921_v26  ;;  %v3150_v61 = vmov 2475754826   ;;  %v3151_v23 = vmov 2131351028  }
  0xe6   :  { %v932_v47 = vshll.u32 %v3150_v61, %v926_v6  ;;  %v935_v40 = vshll.u32 %v3151_v23, %v926_v6  ;;  %v3152_v3 = vmov 2102212464   ;;  %vm801_vm15 = vcmp.eq.s32.totalorder %v2912_v48, 0 }
  0xe7   :  { %v938_v11 = vshll.u32 %v3152_v3, %v926_v6  ;;  %v928_v39 = vshrl.u32 %v2117_v54, %v927_v24  ;;  %v930_v60 = vshrl.u32 %v3150_v61, %v927_v24  ;;  %v933_v32 = vshrl.u32 %v3151_v23, %v927_v24  ;;  %v2947_v49 = vpop.eup %2048 }
  0xe8   :  { %v936_v13 = vshrl.u32 %v3152_v3, %v927_v24  ;;  %vm1223_vm0 = vcmp.eq.s32.totalorder %v2923_v58, 0  ;;  %vm800_vm2 = vcmp.lt.s32.totalorder %v2912_v48, 2  ;;  %v1922_v34 = vadd.s32 4294967294, %v877_v14 }
  0xe9   :  { %v3153_v22 = vmov 920167782   ;;  %v942_v44 = vshrl.u32 %v3144_v16, %v927_v24  ;;  %vm798_vm3 = vweird.f32 %v2563_v57  ;;  %v931_v54 = vor.u32 %v930_v60, %v929_v7 }
  0xea   :  { %v939_v41 = vshrl.u32 %v3153_v22, %v927_v24  ;;  %v941_v37 = vshll.u32 %v3153_v22, %v926_v6  ;;  %v934_v35 = vor.u32 %v933_v32, %v932_v47  ;;  %v937_v19 = vor.u32 %v936_v13, %v935_v40  ;;  %v2951_v18 = vpop.eup %2050 }
  0xeb   :  { %vm944_vm6 = vcmp.lt.s32.totalorder %v925_v46, 1  ;;  %vm1923_vm7 = vcmp.lt.s32.totalorder %v1922_v34, 0  ;;  %vm945_vm8 = vcmp.lt.s32.totalorder %v925_v46, 2  ;;  %vm1222_vm9 = vcmp.lt.s32.totalorder %v2923_v58, 2 }
  0xec   :  { %v940_v38 = vor.u32 %v939_v41, %v938_v11  ;;  %v943_v9 = vor.u32 %v942_v44, %v941_v37  ;;  %v880_v26 = vsel %vm1923_vm7, 0, %v1922_v34  ;;  %vm946_vm10 = vcmp.lt.s32.totalorder %v925_v46, 3 }
  0xed   :  { %vm947_vm13 = vcmp.lt.s32.totalorder %v925_v46, 4  ;;  %v948_v16 = vsel %vm944_vm6, %v928_v39, %v931_v54  ;;  %v881_v6 = vsub.s32 32, %v880_v26  ;;  %v882_v24 = vshll.u32 %v2909_v20, %v880_v26  ;;  %v2961_v3 = vpop.eup %2052 }
  0xee   :  { %v885_v7 = vsub.s32 4294967266, %v880_v26  ;;  %v949_v14 = vsel %vm947_vm13, %v937_v19, 2102212464  ;;  %vm811_vm14 = vcmp.lt.s32.totalorder %v2673_v29, 0  ;;  %v952_v47 = vsel %vm944_vm6, %v931_v54, %v934_v35  ;;  %v2965_v32 = vpop.eup %2054 }
  0xef   :  { %v950_v61 = vsel %vm946_vm10, %v934_v35, %v949_v14  ;;  %v953_v23 = vsel %vm947_vm13, %v940_v38, 920167782  ;;  %v956_v40 = vsel %vm944_vm6, %v934_v35, %v937_v19  ;;  %v883_v11 = vshrl.u32 %v865_v27, %v881_v6 }
  0xf0   :  { %v886_v39 = vadd.s32 127, %v885_v7  ;;  %v951_v60 = vsel %vm945_vm8, %v948_v16, %v950_v61  ;;  %v954_v20 = vsel %vm946_vm10, %v937_v19, %v953_v23  ;;  %v805_v13 = vxor.u32 2147483648, %v2961_v3 }
  0xf1   :  { %v955_v34 = vsel %vm945_vm8, %v952_v47, %v954_v20  ;;  %v957_v22 = vsel %vm947_vm13, %v943_v9, 1326507024  ;;  %v967_v41 = vmul.u32 %v2930_v42, %v951_v60  ;;  %v802_v37 = vxor.u32 2147483648, %v2965_v32 }
  0xf2   :  { %v3154_v44 = vand.u32 2147483647, %v2673_v29  ;;  %v884_v54 = vor.u32 %v883_v11, %v882_v24  ;;  %v887_v35 = vshll.u32 %v886_v39, 23  ;;  %v958_v19 = vsel %vm946_vm10, %v940_v38, %v957_v22 }
  0xf3   :  { %v806_v9 = vsel %vm804_vm12, %v805_v13, %v2965_v32  ;;  %v959_v26 = vsel %vm945_vm8, %v956_v40, %v958_v19  ;;  %v2986_v16 = vmul.u32.u64.low %v2930_v42, %v955_v34  ;;  %v2987_v6 = vmul.u32.u64.high %v2930_v42, %v955_v34, %v2986_v16 }
  0xf4   :  { %vm2974_vm6 = vcmp.le.f32.partialorder %v3154_v44, 0.7853982  ;;  %v803_v24 = vsel %vm801_vm15, %v2961_v3, %v802_v37  ;;  %v888_v38 = vor.u32 4788187, %v887_v35  ;;  %v891_v7 = vcvt.s32.f32 %v884_v54 }
  0xf5   :  { %v3157_v14 = vxor.u32 2147483648, %v2476_v8  ;;  %v807_v61 = vsel %vm800_vm2, %v803_v24, %v806_v9  ;;  %v3003_v47 = vmul.u32.u64.low %v2930_v42, %v959_v26  ;;  %v3004_v23 = vmul.u32.u64.high %v2930_v42, %v959_v26, %v3003_v47 }
  0xf6   :  { %vm1226_vm12 = vcmp.eq.s32.totalorder %v2923_v58, 2  ;;  %v808_v40 = vsel %vm798_vm3, nan, %v807_v61  ;;  %v889_v11 = vand.u32 2147483647, %v888_v38  ;;  %v3158_v39 = vxor.u32 2147483648, %v2470_v53 }
  0xf7   :  { %v1225_v46 = vsel %vm1223_vm0, %v2470_v53, %v3157_v14  ;;  %v1325_v20 = vand.u32 3, %v2926_v28  ;;  %v1020_v34 = vmul.f32 %v808_v40, %v2892_v51  ;;  %v970_v48 = vadd.s32 1, %v2987_v6 }
  0xf8   :  { %v1228_v60 = vsel %vm1226_vm12, %v3158_v39, %v2476_v8  ;;  %v1428_v22 = vadd.s32 3, %v2661_v43  ;;  %v892_v44 = vmul.f32 %v891_v7, %v889_v11  ;;  %v896_v54 = vsel %vm811_vm14, %v895_v45, %v2877_v59 }
  0xf9   :  { %v1229_v42 = vsel %vm1222_vm9, %v1225_v46, %v1228_v60  ;;  %vm1327_vm15 = vcmp.eq.s32.totalorder %v1325_v20, 0  ;;  %1868 = vst [vmem:[#allocation5 + $0x28] sm:$0xff] %v1020_v34  ;;  %vm969_vm0 = vc.u32 %v3004_v23, %v2986_v16  ;;  %vm1326_vm2 = vcmp.lt.s32.totalorder %v1325_v20, 2 }
  0xfa   :  { %v1230_v53 = vsel %vm386_vm5, nan, %v1229_v42  ;;  %v3159_v43 = vxor.u32 2147483648, %v2585_v4  ;;  %v893_v28 = vxor.u32 2147483648, %v892_v44  ;;  %v971_v35 = vsel %vm969_vm0, %v970_v48, %v2987_v6 }
  0xfb   :  { %v1856_v8 = vmul.f32 %v1230_v53, %v2387_v25  ;;  %vm1330_vm7 = vcmp.eq.s32.totalorder %v1325_v20, 2  ;;  %v1429_v59 = vand.u32 3, %v1428_v22  ;;  %v972_v45 = vadd.s32 %v971_v35, %v967_v41 }
  0xfc   :  { %v1329_v58 = vsel %vm1327_vm15, %v2579_v50, %v3159_v43  ;;  %v3160_v21 = vxor.u32 2147483648, %v2579_v50  ;;  %v1532_v9 = vadd.s32 3, %v2814_v56  ;;  %v1636_v25 = vadd.s32 3, %v2907_v36 }
  0xfd   :  { %1872 = vst [vmem:[#allocation5 + $0x48] sm:$0xff] %v1856_v8  ;;  %vm171_vm5 = vcmp.eq.f32.partialorder %v2871_v1, inf  ;;  %v894_v26 = vsel %vm811_vm14, %v893_v28, %v892_v44  ;;  %vm1430_vm8 = vcmp.lt.s32.totalorder %v1429_v59, 2  ;;  %vm1431_vm9 = vcmp.eq.s32.totalorder %v1429_v59, 0 }
  0xfe   :  { %v1332_v19 = vsel %vm1330_vm7, %v3160_v21, %v2585_v4  ;;  %v897_v41 = vsel %vm2974_vm6, %v2673_v29, %v894_v26  ;;  %v973_v6 = vadd.s32 536870912, %v972_v45  ;;  %v3161_v56 = vxor.u32 2147483648, %v2718_v10 }
  0xff   :  { %v1333_v24 = vsel %vm1326_vm2, %v1329_v58, %v1332_v19  ;;  %2056 = vcosq.f32 %v897_v41  ;;  %vm1434_vm10 = vcmp.eq.s32.totalorder %v1429_v59, 2  ;;  %v1533_v38 = vand.u32 3, %v1532_v9 }
 0x100   :  { %v1334_v50 = vsel %vm489_vm1, nan, %v1333_v24  ;;  %v1433_v4 = vsel %vm1431_vm9, %v2714_v12, %v3161_v56  ;;  %2058 = vsinq.f32 %v897_v41  ;;  %v3049_v7 = vshrl.u32 %v973_v6, 30 }
 0x101   :  { %v1857_v36 = vmul.f32 %v1334_v50, %v2558_v55  ;;  %v3162_v14 = vxor.u32 2147483648, %v2714_v12  ;;  %v1637_v61 = vand.u32 3, %v1636_v25  ;;  %vm1534_vm1 = vcmp.lt.s32.totalorder %v1533_v38, 2 }
 0x102   :  { %vm1535_vm13 = vcmp.eq.s32.totalorder %v1533_v38, 0  ;;  %vm1538_vm14 = vcmp.eq.s32.totalorder %v1533_v38, 2  ;;  %v898_v47 = vsel %vm2974_vm6, 0, %v896_v54  ;;  %v975_v55 = vshll.u32 %v3049_v7, 30 }
 0x103   :  { %v1436_v46 = vsel %vm1434_vm10, %v3162_v14, %v2718_v10  ;;  %1873 = vst [vmem:[#allocation5 + $0x50] sm:$0xff] %v1857_v36  ;;  %v1537_v11 = vsel %vm1535_vm13, %v2835_v5, %v699_v0  ;;  %v170_v10 = vmul.f32 %v2947_v49, %v2871_v1  ;;  %v1540_v39 = vsel %vm1538_vm14, %v702_v33, %v2839_v62 }
 0x104   :  { %v1437_v63 = vsel %vm1430_vm8, %v1433_v4, %v1436_v46  ;;  %vm1639_vm12 = vcmp.eq.s32.totalorder %v1637_v61, 0  ;;  %v976_v27 = vsub.s32 %v972_v45, %v975_v55  ;;  %v1541_v60 = vsel %vm1534_vm1, %v1537_v11, %v1540_v39 }
 0x105   :  { %v1438_v40 = vsel %vm592_vm4, nan, %v1437_v63  ;;  %vm1638_vm6 = vcmp.lt.s32.totalorder %v1637_v61, 2  ;;  %v1641_v52 = vsel %vm1639_vm12, %v2961_v3, %v802_v37  ;;  %v902_v20 = vand.u32 3, %v898_v47 }
 0x106   :  { %v1858_v12 = vmul.f32 %v1438_v40, %v2677_v31  ;;  %v1542_v0 = vsel %vm695_vm11, nan, %v1541_v60  ;;  %vm1642_vm4 = vcmp.eq.s32.totalorder %v1637_v61, 2  ;;  %v1740_v49 = vadd.s32 3, %v898_v47 }
 0x107   :  { %v978_v31 = vsub.s32 0, %v976_v27  ;;  %v1859_v34 = vmul.f32 %v1542_v0, %v2777_v30  ;;  %v1644_v5 = vsel %vm1642_vm4, %v805_v13, %v2965_v32  ;;  %v172_v37 = vsel %vm171_vm5, %v2871_v1, %v170_v10 }
 0x108   :  { %1874 = vst [vmem:[#allocation5 + $0x58] sm:$0xff] %v1858_v12  ;;  %v1645_v62 = vsel %vm1638_vm6, %v1641_v52, %v1644_v5  ;;  %v1741_v33 = vand.u32 3, %v1740_v49  ;;  %vm173_vm15 = vcmp.eq.f32.partialorder %v2871_v1, 0.0  ;;  %v174_v17 = vand.u32 2147483648, %v2871_v1 }
 0x109   :  { %v1925_v48 = vmin.u32 %v978_v31, %v976_v27  ;;  %1875 = vst [vmem:[#allocation5 + $0x60] sm:$0xff] %v1859_v34  ;;  %v2057_v42 = vpop.eup %2056  ;;  %vm904_vm11 = vcmp.eq.s32.totalorder %v902_v20, 0  ;;  %vm907_vm0 = vcmp.eq.s32.totalorder %v902_v20, 2  ;;  %v1646_v30 = vsel %vm798_vm3, nan, %v1645_v62 }
 0x10a   :  { %vm1746_vm2 = vcmp.eq.s32.totalorder %v1741_v33, 2  ;;  %v2059_v3 = vpop.eup %2058  ;;  %v908_v32 = vxor.u32 2147483648, %v2057_v42  ;;  %v1860_v22 = vmul.f32 %v1646_v30, %v2892_v51  ;;  %vm1743_vm7 = vcmp.eq.s32.totalorder %v1741_v33, 0 }
 0x10b   :  { %v980_v13 = vclz %v1925_v48  ;;  %vm903_vm5 = vcmp.lt.s32.totalorder %v902_v20, 2  ;;  %v905_v44 = vxor.u32 2147483648, %v2059_v3  ;;  %vm1742_vm8 = vcmp.lt.s32.totalorder %v1741_v33, 2 }
 0x10c   :  { %vm901_vm9 = vweird.f32 %v2673_v29  ;;  %v909_v54 = vsel %vm907_vm0, %v908_v32, %v2059_v3  ;;  %1876 = vst [vmem:[#allocation5 + $0x68] sm:$0xff] %v1860_v22  ;;  %v1748_v8 = vsel %vm1746_vm2, %v908_v32, %v2059_v3  ;;  %v175_v57 = vsel %vm173_vm15, %v174_v17, %v172_v37 }
 0x10d   :  { %v1926_v53 = vadd.s32 4294967294, %v980_v13  ;;  %v906_v43 = vsel %vm904_vm11, %v2057_v42, %v905_v44  ;;  %v1745_v58 = vsel %vm1743_vm7, %v2057_v42, %v905_v44  ;;  %v968_v51 = vadd.s32 %v2986_v16, %v3004_v23 }
 0x10e   :  { %v910_v28 = vsel %vm903_vm5, %v906_v43, %v909_v54  ;;  %v1749_v35 = vsel %vm1742_vm8, %v1745_v58, %v1748_v8  ;;  %v118_v1 = vmul.f32 0.6931472, %v2951_v18  ;;  %v998_v36 = vsub.s32 4, %v3049_v7 }
 0x10f   :  { %vm1927_vm3 = vcmp.lt.s32.totalorder %v1926_v53, 0  ;;  %v911_v59 = vsel %vm901_vm9, nan, %v910_v28  ;;  %v1750_v21 = vsel %vm901_vm9, nan, %v1749_v35  ;;  %vm914_vm10 = vcmp.lt.s32.totalorder %v2853_v15, 0 }
 0x110   :  { %v983_v45 = vsel %vm1927_vm3, 0, %v1926_v53  ;;  %v1021_v29 = vmul.f32 %v911_v59, %v175_v57  ;;  %v1861_v26 = vmul.f32 %v1750_v21, %v175_v57  ;;  %v126_v56 = vmul.f32 -2.0, %v118_v1 }
 0x111   :  { %v984_v19 = vsub.s32 32, %v983_v45  ;;  %v985_v9 = vshll.u32 %v976_v27, %v983_v45  ;;  %v988_v25 = vsub.s32 4294967266, %v983_v45  ;;  %vm913_vm1 = vcmp.le.f32.partialorder %v912_v2, 0.7853982 }
 0x112   :  { %1869 = vst [vmem:[#allocation5 + $0x30] sm:$0xff] %v1021_v29  ;;  %1877 = vst [vmem:[#allocation5 + $0x70] sm:$0xff] %v1861_v26  ;;  %2060 = vrsqrt.f32 %v126_v56  ;;  %v999_v18 = vsel %vm914_vm10, %v998_v36, %v3049_v7  ;;  %vm178_vm13 = vcmp.eq.f32.partialorder %v126_v56, inf  ;;  %vm180_vm14 = vcmp.eq.f32.partialorder %v126_v56, 0.0 }
 0x113   :  { %v986_v24 = vshrl.u32 %v968_v51, %v984_v19  ;;  %v989_v41 = vadd.s32 127, %v988_v25  ;;  %v1001_v63 = vsel %vm913_vm1, 0, %v999_v18  ;;  %v181_v39 = vand.u32 2147483648, %v126_v56 }
 0x114   :  { %v1844_v47 = vadd.s32 3, %v1001_v63  ;;  %v1005_v40 = vand.u32 3, %v1001_v63  ;;  %vm1004_vm2 = vweird.f32 %v2853_v15 }
 0x115   :  { %v987_v6 = vor.u32 %v986_v24, %v985_v9  ;;  %v990_v50 = vshll.u32 %v989_v41, 23 }
 0x116   :  { %v1845_v11 = vand.u32 3, %v1844_v47  ;;  %vm1010_vm12 = vcmp.eq.s32.totalorder %v1005_v40, 2  ;;  %vm1007_vm4 = vcmp.eq.s32.totalorder %v1005_v40, 0  ;;  %vm1006_vm11 = vcmp.lt.s32.totalorder %v1005_v40, 2 }
 0x117   :  { %v991_v16 = vor.u32 4788187, %v990_v50  ;;  %v994_v23 = vcvt.s32.f32 %v987_v6 }
 0x118   :  { %vm1850_vm6 = vcmp.eq.s32.totalorder %v1845_v11, 2  ;;  %vm1847_vm15 = vcmp.eq.s32.totalorder %v1845_v11, 0  ;;  %vm1846_vm0 = vcmp.lt.s32.totalorder %v1845_v11, 2 }
 0x119   :  { %v992_v4 = vand.u32 2147483647, %v991_v16 }
 0x11b   :  { %v995_v38 = vmul.f32 %v994_v23, %v992_v4 }
 0x11c   :  { %v2061_v55 = vpop.eup %2060 }
 0x11d   :  { %v996_v14 = vxor.u32 2147483648, %v995_v38  ;;  %v177_v10 = vmul.f32 %v2061_v55, %v126_v56 }
 0x11f   :  { %v997_v46 = vsel %vm914_vm10, %v996_v14, %v995_v38  ;;  %v179_v27 = vsel %vm178_vm13, %v126_v56, %v177_v10 }
 0x120   :  { %v1000_v61 = vsel %vm913_vm1, %v2853_v15, %v997_v46  ;;  %v182_v0 = vsel %vm180_vm14, %v181_v39, %v179_v27 }
 0x121   :  { %2062 = vcosq.f32 %v1000_v61 }
 0x122   :  { %2064 = vsinq.f32 %v1000_v61 }
 0x12b   :  { %v2063_v12 = vpop.eup %2062 }
 0x12c   :  { %v2065_v2 = vpop.eup %2064  ;;  %v1011_v7 = vxor.u32 2147483648, %v2063_v12 }
 0x12d   :  { %v1008_v60 = vxor.u32 2147483648, %v2065_v2 }
 0x12e   :  { %v1012_v52 = vsel %vm1010_vm12, %v1011_v7, %v2065_v2  ;;  %v1852_v20 = vsel %vm1850_vm6, %v1011_v7, %v2065_v2 }
 0x12f   :  { %v1009_v49 = vsel %vm1007_vm4, %v2063_v12, %v1008_v60  ;;  %v1849_v31 = vsel %vm1847_vm15, %v2063_v12, %v1008_v60 }
 0x130   :  { %v1013_v34 = vsel %vm1006_vm11, %v1009_v49, %v1012_v52  ;;  %v1853_v5 = vsel %vm1846_vm0, %v1849_v31, %v1852_v20 }
 0x131   :  { %v1014_v62 = vsel %vm1004_vm2, nan, %v1013_v34  ;;  %v1854_v33 = vsel %vm1004_vm2, nan, %v1853_v5 }
 0x132   :  { %v1022_v37 = vmul.f32 %v1014_v62, %v182_v0  ;;  %v1862_v17 = vmul.f32 %v1854_v33, %v182_v0 }
 0x134   :  { %1870 = vst [vmem:[#allocation5 + $0x38] sm:$0xff] %v1022_v37  ;;  %1878 = vst [vmem:[#allocation5 + $0x78] sm:$0xff] %v1862_v17 }
 0x135   :  { %2099 = shalt.err (!%p2096_p12)
}
 0x136   :  { %s2100_s24 = scalar_lea.hbm %s3115_s1, 2048 }
 0x137   :  { %p2101_p13 = scmp.ne.s32.totalorder %s3115_s1, %s2100_s24  ;;  %p2104_p0 = scmp.lt.u32.totalorder %s2100_s24, %s3115_s1 }
 0x139   :  { %p2106_p1 = pnand %p2104_p0, %p2101_p13 }
 0x13b   :  { %2109 = shalt.err (!%p2106_p1)
}
 0x13c   :  { %1890 = dma.vmem_to_hbm [thread:$0]  %s1885_s20, 2048, %s3115_s1, [#allocation4], %s2115_s16, %s2115_s16, %s2116_s17  }
 0x13d   :  { %2112 = dma.done.wait [#allocation4], 2048  }
 0x13e   :  { %2113 = vsyncadd [#allocation4], 4294965248 }
 0x13f   :  { %1894 = vsyncpa [#allocation3], 1 }
 0x140   :  { %1895 = vsyncpa [#allocation4], 1 }

</bundles_post_ra>
